<compile_context>
chip_gen: v5e
topology: v5e:2x2
jax: 0.10.0
libtpu: 0.0.40
codegen_flags: <defaults>
</compile_context>

<pallas_src>
import numpy as np
import jax
import jax.numpy as jnp
from jax.experimental import pallas as pl
from jax.experimental.pallas import tpu as pltpu


# ----------------------------------------------------------------------------
# Host-side weight preprocessing
# ----------------------------------------------------------------------------
def _conv_out(size, k, stride, pad):
    return (size + 2 * pad - k) // stride + 1


def _col_pos(w, wi, pad):
    """Physical lane-block position of padded column `w`.

    Interior columns are stored first (lane offset 0); the 2*pad zero columns
    live at the end of the lane axis.
    """
    if w < pad:
        return wi + w
    if w < pad + wi:
        return w - pad
    return wi + pad + (w - (pad + wi))


def _build_layer_tables(params, hi, wi, stride, pad, eps=1e-5):
    """Fold BN into the conv and build per-kernel-row block-Toeplitz matrices.

    Returns:
      t    : (kh, Wp*Cin, Wo*Cout) bf16 per-row GEMM weights (BN scale folded)
      bias : (Wo*Cout,) f32 shift (conv bias + BN) tiled over Wo
      ho, wo, cout, kh
    """
    w, b, gamma, beta, mean, var = (np.asarray(p, np.float32) for p in params)
    cout, cin, kh, kw = w.shape
    ho = _conv_out(hi, kh, stride, pad)
    wo = _conv_out(wi, kw, stride, pad)
    wp = wi + 2 * pad

    inv = gamma / np.sqrt(var + eps)                       # (cout,)
    shift = beta + (b - mean) * inv                        # (cout,)
    wsc = w * inv[:, None, None, None]                     # scale into weights

    t = np.zeros((kh, wp * cin, wo * cout), np.float32)
    for ky in range(kh):
        for ox in range(wo):
            for kx in range(kw):
                p = _col_pos(stride * ox + kx, wi, pad)
                t[ky, p * cin:(p + 1) * cin, ox * cout:(ox + 1) * cout] = (
                    wsc[:, :, ky, kx].T)
    bias = np.tile(shift, wo).astype(np.float32)
    return jnp.asarray(t, jnp.bfloat16), bias, ho, wo, cout, kh


def _prep_input(x_nchw, pad):
    """NCHW -> padded, channel-last, W/C folded: (N*(H+2p), (W+2p)*C) f32."""
    n, c, h, w = x_nchw.shape
    xh = jnp.transpose(x_nchw, (0, 2, 3, 1)).astype(jnp.float32)   # NHWC
    # W-pad columns appended at the end of the lane axis (matches _col_pos)
    xw = jnp.concatenate(
        [xh, jnp.zeros((n, h, 2 * pad, c), jnp.float32)], axis=2)
    xp = jnp.pad(xw, ((0, 0), (pad, pad), (0, 0), (0, 0)))
    return xp.reshape(n * (h + 2 * pad), (w + 2 * pad) * c)


# ----------------------------------------------------------------------------
# The fused encoder kernel
# ----------------------------------------------------------------------------
def _make_encoder_kernel(layers, n_batch, n_outputs, pad):
    n_layers = len(layers)

    def kernel(*refs):
        x_ref = refs[0]
        t_refs = refs[1:1 + n_layers]
        bias_ref = refs[1 + n_layers]
        out_refs = refs[2 + n_layers:2 + n_layers + n_outputs]
        scr_refs = refs[2 + n_layers + n_outputs:]

        # --- zero ONLY the padding borders of the staged activations -------
        # (the interior rows / lanes are fully overwritten by each layer)
        for si, lyr in enumerate(layers[:-1]):
            s = scr_refs[si]
            hp, ho = lyr["hp_out"], lyr["ho"]
            int_lanes = lyr["wo"] * lyr["cout"]
            pad_lanes = 2 * pad * lyr["cout"]
            s[:, pl.ds(int_lanes, pad_lanes)] = jnp.zeros(
                (n_batch * hp, pad_lanes), s.dtype)
            for nb in range(n_batch):
                s[pl.ds(nb * hp, pad), pl.ds(0, int_lanes)] = jnp.zeros(
                    (pad, int_lanes), s.dtype)
                s[pl.ds(nb * hp + pad + ho, pad), pl.ds(0, int_lanes)] = (
                    jnp.zeros((pad, int_lanes), s.dtype))

        # --- layers ---------------------------------------------------------
        for li, lyr in enumerate(layers):
            src = x_ref if lyr["src"] is None else scr_refs[lyr["src"]]
            lanes = lyr["wo"] * lyr["cout"]
            ho, kh, st = lyr["ho"], lyr["kh"], lyr["stride"]
            row_step = lyr["hp_in"] // st          # hp_in % st == 0 (asserted)
            mg = (n_batch - 1) * row_step + ho     # all batches in one GEMM M

            acc = jnp.zeros((mg, lanes), jnp.float32)
            for ky in range(kh):
                if st == 1:
                    lhs = src[pl.ds(ky, mg), :]
                else:
                    lhs = src[pl.ds(ky, mg, stride=st), :]
                acc = acc + jnp.dot(lhs.astype(jnp.bfloat16), t_refs[li][ky],
                                    preferred_element_type=jnp.float32)
            acc = acc + bias_ref[pl.ds(li, 1), pl.ds(0, lanes)]   # (1, lanes)

            # per-batch epilogue: residual add, ReLU, stores
            for nb in range(n_batch):
                y = acc[nb * row_step:nb * row_step + ho, :]
                if lyr["res"] is not None:          # residual add from VMEM
                    rlyr = layers[lyr["res"]]
                    skip = scr_refs[lyr["res"]][
                        pl.ds(nb * rlyr["hp_out"] + pad, ho), pl.ds(0, lanes)]
                    y = y + skip.astype(jnp.float32)
                y = jnp.maximum(y, 0.0)             # ReLU
                if lyr["out"] is not None:          # lane-dense output slab
                    out_refs[lyr["out"]][:, pl.ds(nb * lanes, lanes)] = y
                if lyr["dst"] is not None:          # stage for next layer
                    dst = scr_refs[lyr["dst"]]
                    dst[pl.ds(nb * lyr["hp_out"] + pad, ho),
                        pl.ds(0, lanes)] = y.astype(dst.dtype)

    return kernel


# ----------------------------------------------------------------------------
# Encoder forward
# ----------------------------------------------------------------------------
def encoder_forward(x, params, *, stride, padding):
    """Returns (out, [skip1, skip2, skip3, skip4]) in NCHW, like PyTorch."""
    assert padding == 1, "kernel assumes padding=1 (matches ResidualBlock)"
    n, _, h, w = x.shape
    pad = padding

    layer_params = [params[k] for k in
                    ("e1", "e2a", "e2b", "e3", "e4a", "e4b", "e5")]
    strides = [stride, 1, 1, stride, 1, 1, stride]
    src_of = [None, 0, 1, 2, 3, 4, 5]      # scratch holding the layer input
    dst_of = [0, 1, 2, 3, 4, 5, None]      # scratch receiving the output
    out_of = [0, None, 1, 2, None, 3, 4]   # kernel-output index
    res_of = [None, None, 0, None, None, 3, None]  # residual source scratch

    layers, tables, bias_rows = [], [], []
    ch, cw = h, w
    for prm, s, si, di, oi, ri in zip(layer_params, strides, src_of, dst_of,
                                      out_of, res_of):
        t, bias, ho, wo, co, kh = _build_layer_tables(prm, ch, cw, s, pad)
        hp_in = ch + 2 * pad
        if s > 1:
            assert hp_in % s == 0, "batched strided read needs Hpad % stride == 0"
        layers.append(dict(kh=kh, stride=s, ho=ho, wo=wo, cout=co,
                           hp_in=hp_in, hp_out=ho + 2 * pad,
                           src=si, dst=di, out=oi, res=ri))
        tables.append(t)
        bias_rows.append(bias)
        ch, cw = ho, wo

    # sanity: residual source layout must match the consuming layer exactly
    for lyr in layers:
        if lyr["res"] is not None:
            r = layers[lyr["res"]]
            assert (r["wo"], r["cout"], r["ho"]) == (lyr["wo"], lyr["cout"],
                                                     lyr["ho"])

    # one packed bias slab (n_layers, max_lanes) f32
    max_lanes = max(b.shape[0] for b in bias_rows)
    bias_slab = np.zeros((len(layers), max_lanes), np.float32)
    for i, b in enumerate(bias_rows):
        bias_slab[i, :b.shape[0]] = b
    bias_slab = jnp.asarray(bias_slab)

    # per staged activation: bf16 unless it is re-read with a strided sublane
    # slice (stride-2 consumer), which stays on the proven f32 load path.
    scratch_dtypes = [jnp.float32 if layers[i + 1]["stride"] > 1 else jnp.bfloat16
                      for i in range(len(layers) - 1)]
    scratch_shapes = [
        pltpu.VMEM((n * layers[i]["hp_out"],
                    (layers[i]["wo"] + 2 * pad) * layers[i]["cout"]),
                   scratch_dtypes[i])
        for i in range(len(layers) - 1)
    ]

    out_layer_ids = [0, 2, 3, 5, 6]        # skip1, skip2, skip3, skip4, out
    out_shapes = tuple(
        jax.ShapeDtypeStruct(
            (layers[i]["ho"], n * layers[i]["wo"] * layers[i]["cout"]),
            jnp.float32)
        for i in out_layer_ids)

    kernel_inputs = [_prep_input(x, pad)] + list(tables) + [bias_slab]

    in_specs = [pl.BlockSpec(a.shape, lambda i, nd=a.ndim: (0,) * nd)
                for a in kernel_inputs]
    out_specs = tuple(pl.BlockSpec(s.shape, lambda i, nd=len(s.shape): (0,) * nd)
                      for s in out_shapes)

    # advisory cost estimate
    flops = 0
    for i, lyr in enumerate(layers):
        row_step = lyr["hp_in"] // lyr["stride"]
        mg = (n - 1) * row_step + lyr["ho"]
        flops += 2 * lyr["kh"] * mg * tables[i].shape[1] * lyr["wo"] * lyr["cout"]
    bytes_accessed = sum(int(np.prod(a.shape)) * a.dtype.itemsize
                         for a in kernel_inputs)
    bytes_accessed += sum(int(np.prod(s.shape)) * 4 for s in out_shapes)

    kernel = _make_encoder_kernel(layers, n, len(out_shapes), pad)
    outs = pl.pallas_call(
        kernel,
        out_shape=out_shapes,
        grid=(1,),
        in_specs=in_specs,
        out_specs=out_specs,
        scratch_shapes=scratch_shapes,
        compiler_params=pltpu.CompilerParams(
            dimension_semantics=("arbitrary",),
            vmem_limit_bytes=32 * 1024 * 1024),
        cost_estimate=pl.CostEstimate(flops=flops, transcendentals=0,
                                      bytes_accessed=bytes_accessed),
    )(*kernel_inputs)

    def to_nchw(y, i):
        lyr = layers[i]
        # output layout: (ho, n*wo*cout) with batch folded onto lanes
        return (y.reshape(lyr["ho"], n, lyr["wo"], lyr["cout"])
                 .transpose(1, 3, 0, 2))

    skip1, skip2, skip3, skip4, out = (to_nchw(o, i)
                                       for o, i in zip(outs, out_layer_ids))
    return out, [skip1, skip2, skip3, skip4]


# ----------------------------------------------------------------------------
# Parameter init (deterministic, synthetic)
# ----------------------------------------------------------------------------
def _init_conv_bn(key, cin, cout, kh, kw):
    k1, k2, k3, k4, k5, k6 = jax.random.split(key, 6)
    fan_in = cin * kh * kw
    w = jax.random.normal(k1, (cout, cin, kh, kw), jnp.float32) / jnp.sqrt(fan_in)
    b = 0.1 * jax.random.normal(k2, (cout,), jnp.float32)
    gamma = 1.0 + 0.1 * jax.random.normal(k3, (cout,), jnp.float32)
    beta = 0.1 * jax.random.normal(k4, (cout,), jnp.float32)
    mean = 0.1 * jax.random.normal(k5, (cout,), jnp.float32)
    var = 1.0 + 0.1 * jnp.abs(jax.random.normal(k6, (cout,), jnp.float32))
    return (w, b, gamma, beta, mean, var)


def init_encoder_params(key, in_channels, num_filters, kernel_size):
    keys = jax.random.split(key, 7)
    kh = kw = kernel_size
    nf = num_filters
    return {
        "e1": _init_conv_bn(keys[0], in_channels, nf, kh, kw),
        "e2a": _init_conv_bn(keys[1], nf, nf, 3, 3),
        "e2b": _init_conv_bn(keys[2], nf, nf, 3, 3),
        "e3": _init_conv_bn(keys[3], nf, 2 * nf, kh, kw),
        "e4a": _init_conv_bn(keys[4], 2 * nf, 2 * nf, 3, 3),
        "e4b": _init_conv_bn(keys[5], 2 * nf, 2 * nf, 3, 3),
        "e5": _init_conv_bn(keys[6], 2 * nf, 4 * nf, kh, kw),
    }


# ----------------------------------------------------------------------------
# Plain-XLA reference (for a numerical self-check)
# ----------------------------------------------------------------------------
def _ref_conv_bn_relu(x, prm, stride, pad, residual=None, eps=1e-5):
    w, b, gamma, beta, mean, var = prm
    y = jax.lax.conv_general_dilated(
        x, w, window_strides=(stride, stride),
        padding=((pad, pad), (pad, pad)),
        dimension_numbers=("NCHW", "OIHW", "NCHW"))
    y = y + b[None, :, None, None]
    y = (y - mean[None, :, None, None]) / jnp.sqrt(var[None, :, None, None] + eps)
    y = y * gamma[None, :, None, None] + beta[None, :, None, None]
    if residual is not None:
        y = y + residual
    return jnp.maximum(y, 0.0)


def _ref_encoder(x, params, stride, pad):
    s1 = _ref_conv_bn_relu(x, params["e1"], stride, pad)
    h1 = _ref_conv_bn_relu(s1, params["e2a"], 1, 1)
    s2 = _ref_conv_bn_relu(h1, params["e2b"], 1, 1, residual=s1)
    s3 = _ref_conv_bn_relu(s2, params["e3"], stride, pad)
    h2 = _ref_conv_bn_relu(s3, params["e4a"], 1, 1)
    s4 = _ref_conv_bn_relu(h2, params["e4b"], 1, 1, residual=s3)
    out = _ref_conv_bn_relu(s4, params["e5"], stride, pad)
    return out, [s1, s2, s3, s4]


# ----------------------------------------------------------------------------
if __name__ == "__main__":
    # config: in_channels=4, num_filters=8, kernel_size=3, stride=2, padding=1
    IN_CH, NF, KS, STRIDE, PAD = 4, 8, 3, 2, 1
    N, H, W = 2, 16, 16

    key = jax.random.PRNGKey(0)
    kx, kp = jax.random.split(key)
    x = jax.random.normal(kx, (N, IN_CH, H, W), jnp.float32)
    params = init_encoder_params(kp, IN_CH, NF, KS)

    out, skips = encoder_forward(x, params, stride=STRIDE, padding=PAD)
    jax.block_until_ready(out)
    for s in skips:
        jax.block_until_ready(s)

    assert out.shape == (N, 4 * NF, H // 8, W // 8), out.shape
    assert skips[0].shape == (N, NF, H // 2, W // 2)
    assert skips[1].shape == (N, NF, H // 2, W // 2)
    assert skips[2].shape == (N, 2 * NF, H // 4, W // 4)
    assert skips[3].shape == (N, 2 * NF, H // 4, W // 4)

    # numerical self-check vs. plain XLA (loose tol: bf16 MXU operands/scratch)
    ref_out, ref_skips = _ref_encoder(x, params, STRIDE, PAD)
    for got, ref in zip([out] + skips, [ref_out] + ref_skips):
        err = float(jnp.max(jnp.abs(got - ref)))
        assert jnp.allclose(got, ref, rtol=1e-1, atol=1e-1), err

    print("KERNEL_OK")
</pallas_src>

<mosaic_0001>
module attributes {stable_mosaic.version = 11 : i64} {
  func.func @kernel(%arg0: i32, %arg1: memref<36x72xf32, #tpu.memory_space<vmem>>, %arg2: memref<3x72x64xbf16, #tpu.memory_space<vmem>>, %arg3: memref<3x80x64xbf16, #tpu.memory_space<vmem>>, %arg4: memref<3x80x64xbf16, #tpu.memory_space<vmem>>, %arg5: memref<3x80x64xbf16, #tpu.memory_space<vmem>>, %arg6: memref<3x96x64xbf16, #tpu.memory_space<vmem>>, %arg7: memref<3x96x64xbf16, #tpu.memory_space<vmem>>, %arg8: memref<3x96x64xbf16, #tpu.memory_space<vmem>>, %arg9: memref<7x64xf32, #tpu.memory_space<vmem>>, %arg10: memref<8x128xf32, #tpu.memory_space<vmem>>, %arg11: memref<8x128xf32, #tpu.memory_space<vmem>>, %arg12: memref<4x128xf32, #tpu.memory_space<vmem>>, %arg13: memref<4x128xf32, #tpu.memory_space<vmem>>, %arg14: memref<2x128xf32, #tpu.memory_space<vmem>>, %arg15: memref<20x80xbf16, #tpu.memory_space<vmem>>, %arg16: memref<20x80xbf16, #tpu.memory_space<vmem>>, %arg17: memref<20x80xf32, #tpu.memory_space<vmem>>, %arg18: memref<12x96xbf16, #tpu.memory_space<vmem>>, %arg19: memref<12x96xbf16, #tpu.memory_space<vmem>>, %arg20: memref<12x96xf32, #tpu.memory_space<vmem>>) attributes {dimension_semantics = [#tpu.dimension_semantics<arbitrary>], iteration_bounds = array<i64: 1>, scalar_prefetch = 0 : i64, scratch_operands = 6 : i64, tpu.core_type = #tpu.core_type<tc>, window_params = [{pipeline_mode = #tpu.pipeline_mode<synchronous>, transform_indices = @transform_0, window_bounds = array<i64: 36, 72>}, {pipeline_mode = #tpu.pipeline_mode<synchronous>, transform_indices = @transform_1, window_bounds = array<i64: 3, 72, 64>}, {pipeline_mode = #tpu.pipeline_mode<synchronous>, transform_indices = @transform_2, window_bounds = array<i64: 3, 80, 64>}, {pipeline_mode = #tpu.pipeline_mode<synchronous>, transform_indices = @transform_3, window_bounds = array<i64: 3, 80, 64>}, {pipeline_mode = #tpu.pipeline_mode<synchronous>, transform_indices = @transform_4, window_bounds = array<i64: 3, 80, 64>}, {pipeline_mode = #tpu.pipeline_mode<synchronous>, transform_indices = @transform_5, window_bounds = array<i64: 3, 96, 64>}, {pipeline_mode = #tpu.pipeline_mode<synchronous>, transform_indices = @transform_6, window_bounds = array<i64: 3, 96, 64>}, {pipeline_mode = #tpu.pipeline_mode<synchronous>, transform_indices = @transform_7, window_bounds = array<i64: 3, 96, 64>}, {pipeline_mode = #tpu.pipeline_mode<synchronous>, transform_indices = @transform_8, window_bounds = array<i64: 7, 64>}, {pipeline_mode = #tpu.pipeline_mode<synchronous>, transform_indices = @transform_9, window_bounds = array<i64: 8, 128>}, {pipeline_mode = #tpu.pipeline_mode<synchronous>, transform_indices = @transform_10, window_bounds = array<i64: 8, 128>}, {pipeline_mode = #tpu.pipeline_mode<synchronous>, transform_indices = @transform_11, window_bounds = array<i64: 4, 128>}, {pipeline_mode = #tpu.pipeline_mode<synchronous>, transform_indices = @transform_12, window_bounds = array<i64: 4, 128>}, {pipeline_mode = #tpu.pipeline_mode<synchronous>, transform_indices = @transform_13, window_bounds = array<i64: 2, 128>}]} {
    %cst = arith.constant 0.000000e+00 : bf16
    %0 = vector.broadcast %cst : bf16 to vector<20x16xbf16>
    %c0 = arith.constant 0 : index
    %c64 = arith.constant 64 : index
    %1 = vector.load %arg15[%c0, %c64] : memref<20x80xbf16, #tpu.memory_space<vmem>>, vector<20x16xbf16>
    tpu.vector_store %arg15[%c0, %c64], %0 {strides = array<i32>} : memref<20x80xbf16, #tpu.memory_space<vmem>>, vector<20x16xbf16>,
    %cst_0 = arith.constant 0.000000e+00 : bf16
    %2 = vector.broadcast %cst_0 : bf16 to vector<1x64xbf16>
    %c0_1 = arith.constant 0 : index
    %c0_2 = arith.constant 0 : index
    %3 = vector.load %arg15[%c0_1, %c0_2] : memref<20x80xbf16, #tpu.memory_space<vmem>>, vector<1x64xbf16>
    tpu.vector_store %arg15[%c0_1, %c0_2], %2 {strides = array<i32>} : memref<20x80xbf16, #tpu.memory_space<vmem>>, vector<1x64xbf16>,
    %cst_3 = arith.constant 0.000000e+00 : bf16
    %4 = vector.broadcast %cst_3 : bf16 to vector<1x64xbf16>
    %c9 = arith.constant 9 : index
    %c0_4 = arith.constant 0 : index
    %5 = vector.load %arg15[%c9, %c0_4] : memref<20x80xbf16, #tpu.memory_space<vmem>>, vector<1x64xbf16>
    tpu.vector_store %arg15[%c9, %c0_4], %4 {strides = array<i32>} : memref<20x80xbf16, #tpu.memory_space<vmem>>, vector<1x64xbf16>,
    %cst_5 = arith.constant 0.000000e+00 : bf16
    %6 = vector.broadcast %cst_5 : bf16 to vector<1x64xbf16>
    %c10 = arith.constant 10 : index
    %c0_6 = arith.constant 0 : index
    %7 = vector.load %arg15[%c10, %c0_6] : memref<20x80xbf16, #tpu.memory_space<vmem>>, vector<1x64xbf16>
    tpu.vector_store %arg15[%c10, %c0_6], %6 {strides = array<i32>} : memref<20x80xbf16, #tpu.memory_space<vmem>>, vector<1x64xbf16>,
    %cst_7 = arith.constant 0.000000e+00 : bf16
    %8 = vector.broadcast %cst_7 : bf16 to vector<1x64xbf16>
    %c19 = arith.constant 19 : index
    %c0_8 = arith.constant 0 : index
    %9 = vector.load %arg15[%c19, %c0_8] : memref<20x80xbf16, #tpu.memory_space<vmem>>, vector<1x64xbf16>
    tpu.vector_store %arg15[%c19, %c0_8], %8 {strides = array<i32>} : memref<20x80xbf16, #tpu.memory_space<vmem>>, vector<1x64xbf16>,
    %cst_9 = arith.constant 0.000000e+00 : bf16
    %10 = vector.broadcast %cst_9 : bf16 to vector<20x16xbf16>
    %c0_10 = arith.constant 0 : index
    %c64_11 = arith.constant 64 : index
    %11 = vector.load %arg16[%c0_10, %c64_11] : memref<20x80xbf16, #tpu.memory_space<vmem>>, vector<20x16xbf16>
    tpu.vector_store %arg16[%c0_10, %c64_11], %10 {strides = array<i32>} : memref<20x80xbf16, #tpu.memory_space<vmem>>, vector<20x16xbf16>,
    %cst_12 = arith.constant 0.000000e+00 : bf16
    %12 = vector.broadcast %cst_12 : bf16 to vector<1x64xbf16>
    %c0_13 = arith.constant 0 : index
    %c0_14 = arith.constant 0 : index
    %13 = vector.load %arg16[%c0_13, %c0_14] : memref<20x80xbf16, #tpu.memory_space<vmem>>, vector<1x64xbf16>
    tpu.vector_store %arg16[%c0_13, %c0_14], %12 {strides = array<i32>} : memref<20x80xbf16, #tpu.memory_space<vmem>>, vector<1x64xbf16>,
    %cst_15 = arith.constant 0.000000e+00 : bf16
    %14 = vector.broadcast %cst_15 : bf16 to vector<1x64xbf16>
    %c9_16 = arith.constant 9 : index
    %c0_17 = arith.constant 0 : index
    %15 = vector.load %arg16[%c9_16, %c0_17] : memref<20x80xbf16, #tpu.memory_space<vmem>>, vector<1x64xbf16>
    tpu.vector_store %arg16[%c9_16, %c0_17], %14 {strides = array<i32>} : memref<20x80xbf16, #tpu.memory_space<vmem>>, vector<1x64xbf16>,
    %cst_18 = arith.constant 0.000000e+00 : bf16
    %16 = vector.broadcast %cst_18 : bf16 to vector<1x64xbf16>
    %c10_19 = arith.constant 10 : index
    %c0_20 = arith.constant 0 : index
    %17 = vector.load %arg16[%c10_19, %c0_20] : memref<20x80xbf16, #tpu.memory_space<vmem>>, vector<1x64xbf16>
    tpu.vector_store %arg16[%c10_19, %c0_20], %16 {strides = array<i32>} : memref<20x80xbf16, #tpu.memory_space<vmem>>, vector<1x64xbf16>,
    %cst_21 = arith.constant 0.000000e+00 : bf16
    %18 = vector.broadcast %cst_21 : bf16 to vector<1x64xbf16>
    %c19_22 = arith.constant 19 : index
    %c0_23 = arith.constant 0 : index
    %19 = vector.load %arg16[%c19_22, %c0_23] : memref<20x80xbf16, #tpu.memory_space<vmem>>, vector<1x64xbf16>
    tpu.vector_store %arg16[%c19_22, %c0_23], %18 {strides = array<i32>} : memref<20x80xbf16, #tpu.memory_space<vmem>>, vector<1x64xbf16>,
    %cst_24 = arith.constant 0.000000e+00 : f32
    %20 = vector.broadcast %cst_24 : f32 to vector<20x16xf32>
    %c0_25 = arith.constant 0 : index
    %c64_26 = arith.constant 64 : index
    %21 = vector.load %arg17[%c0_25, %c64_26] : memref<20x80xf32, #tpu.memory_space<vmem>>, vector<20x16xf32>
    tpu.vector_store %arg17[%c0_25, %c64_26], %20 {strides = array<i32>} : memref<20x80xf32, #tpu.memory_space<vmem>>, vector<20x16xf32>,
    %cst_27 = arith.constant 0.000000e+00 : f32
    %22 = vector.broadcast %cst_27 : f32 to vector<1x64xf32>
    %c0_28 = arith.constant 0 : index
    %c0_29 = arith.constant 0 : index
    %23 = vector.load %arg17[%c0_28, %c0_29] : memref<20x80xf32, #tpu.memory_space<vmem>>, vector<1x64xf32>
    tpu.vector_store %arg17[%c0_28, %c0_29], %22 {strides = array<i32>} : memref<20x80xf32, #tpu.memory_space<vmem>>, vector<1x64xf32>,
    %cst_30 = arith.constant 0.000000e+00 : f32
    %24 = vector.broadcast %cst_30 : f32 to vector<1x64xf32>
    %c9_31 = arith.constant 9 : index
    %c0_32 = arith.constant 0 : index
    %25 = vector.load %arg17[%c9_31, %c0_32] : memref<20x80xf32, #tpu.memory_space<vmem>>, vector<1x64xf32>
    tpu.vector_store %arg17[%c9_31, %c0_32], %24 {strides = array<i32>} : memref<20x80xf32, #tpu.memory_space<vmem>>, vector<1x64xf32>,
    %cst_33 = arith.constant 0.000000e+00 : f32
    %26 = vector.broadcast %cst_33 : f32 to vector<1x64xf32>
    %c10_34 = arith.constant 10 : index
    %c0_35 = arith.constant 0 : index
    %27 = vector.load %arg17[%c10_34, %c0_35] : memref<20x80xf32, #tpu.memory_space<vmem>>, vector<1x64xf32>
    tpu.vector_store %arg17[%c10_34, %c0_35], %26 {strides = array<i32>} : memref<20x80xf32, #tpu.memory_space<vmem>>, vector<1x64xf32>,
    %cst_36 = arith.constant 0.000000e+00 : f32
    %28 = vector.broadcast %cst_36 : f32 to vector<1x64xf32>
    %c19_37 = arith.constant 19 : index
    %c0_38 = arith.constant 0 : index
    %29 = vector.load %arg17[%c19_37, %c0_38] : memref<20x80xf32, #tpu.memory_space<vmem>>, vector<1x64xf32>
    tpu.vector_store %arg17[%c19_37, %c0_38], %28 {strides = array<i32>} : memref<20x80xf32, #tpu.memory_space<vmem>>, vector<1x64xf32>,
    %cst_39 = arith.constant 0.000000e+00 : bf16
    %30 = vector.broadcast %cst_39 : bf16 to vector<12x32xbf16>
    %c0_40 = arith.constant 0 : index
    %c64_41 = arith.constant 64 : index
    %31 = vector.load %arg18[%c0_40, %c64_41] : memref<12x96xbf16, #tpu.memory_space<vmem>>, vector<12x32xbf16>
    tpu.vector_store %arg18[%c0_40, %c64_41], %30 {strides = array<i32>} : memref<12x96xbf16, #tpu.memory_space<vmem>>, vector<12x32xbf16>,
    %cst_42 = arith.constant 0.000000e+00 : bf16
    %32 = vector.broadcast %cst_42 : bf16 to vector<1x64xbf16>
    %c0_43 = arith.constant 0 : index
    %c0_44 = arith.constant 0 : index
    %33 = vector.load %arg18[%c0_43, %c0_44] : memref<12x96xbf16, #tpu.memory_space<vmem>>, vector<1x64xbf16>
    tpu.vector_store %arg18[%c0_43, %c0_44], %32 {strides = array<i32>} : memref<12x96xbf16, #tpu.memory_space<vmem>>, vector<1x64xbf16>,
    %cst_45 = arith.constant 0.000000e+00 : bf16
    %34 = vector.broadcast %cst_45 : bf16 to vector<1x64xbf16>
    %c5 = arith.constant 5 : index
    %c0_46 = arith.constant 0 : index
    %35 = vector.load %arg18[%c5, %c0_46] : memref<12x96xbf16, #tpu.memory_space<vmem>>, vector<1x64xbf16>
    tpu.vector_store %arg18[%c5, %c0_46], %34 {strides = array<i32>} : memref<12x96xbf16, #tpu.memory_space<vmem>>, vector<1x64xbf16>,
    %cst_47 = arith.constant 0.000000e+00 : bf16
    %36 = vector.broadcast %cst_47 : bf16 to vector<1x64xbf16>
    %c6 = arith.constant 6 : index
    %c0_48 = arith.constant 0 : index
    %37 = vector.load %arg18[%c6, %c0_48] : memref<12x96xbf16, #tpu.memory_space<vmem>>, vector<1x64xbf16>
    tpu.vector_store %arg18[%c6, %c0_48], %36 {strides = array<i32>} : memref<12x96xbf16, #tpu.memory_space<vmem>>, vector<1x64xbf16>,
    %cst_49 = arith.constant 0.000000e+00 : bf16
    %38 = vector.broadcast %cst_49 : bf16 to vector<1x64xbf16>
    %c11 = arith.constant 11 : index
    %c0_50 = arith.constant 0 : index
    %39 = vector.load %arg18[%c11, %c0_50] : memref<12x96xbf16, #tpu.memory_space<vmem>>, vector<1x64xbf16>
    tpu.vector_store %arg18[%c11, %c0_50], %38 {strides = array<i32>} : memref<12x96xbf16, #tpu.memory_space<vmem>>, vector<1x64xbf16>,
    %cst_51 = arith.constant 0.000000e+00 : bf16
    %40 = vector.broadcast %cst_51 : bf16 to vector<12x32xbf16>
    %c0_52 = arith.constant 0 : index
    %c64_53 = arith.constant 64 : index
    %41 = vector.load %arg19[%c0_52, %c64_53] : memref<12x96xbf16, #tpu.memory_space<vmem>>, vector<12x32xbf16>
    tpu.vector_store %arg19[%c0_52, %c64_53], %40 {strides = array<i32>} : memref<12x96xbf16, #tpu.memory_space<vmem>>, vector<12x32xbf16>,
    %cst_54 = arith.constant 0.000000e+00 : bf16
    %42 = vector.broadcast %cst_54 : bf16 to vector<1x64xbf16>
    %c0_55 = arith.constant 0 : index
    %c0_56 = arith.constant 0 : index
    %43 = vector.load %arg19[%c0_55, %c0_56] : memref<12x96xbf16, #tpu.memory_space<vmem>>, vector<1x64xbf16>
    tpu.vector_store %arg19[%c0_55, %c0_56], %42 {strides = array<i32>} : memref<12x96xbf16, #tpu.memory_space<vmem>>, vector<1x64xbf16>,
    %cst_57 = arith.constant 0.000000e+00 : bf16
    %44 = vector.broadcast %cst_57 : bf16 to vector<1x64xbf16>
    %c5_58 = arith.constant 5 : index
    %c0_59 = arith.constant 0 : index
    %45 = vector.load %arg19[%c5_58, %c0_59] : memref<12x96xbf16, #tpu.memory_space<vmem>>, vector<1x64xbf16>
    tpu.vector_store %arg19[%c5_58, %c0_59], %44 {strides = array<i32>} : memref<12x96xbf16, #tpu.memory_space<vmem>>, vector<1x64xbf16>,
    %cst_60 = arith.constant 0.000000e+00 : bf16
    %46 = vector.broadcast %cst_60 : bf16 to vector<1x64xbf16>
    %c6_61 = arith.constant 6 : index
    %c0_62 = arith.constant 0 : index
    %47 = vector.load %arg19[%c6_61, %c0_62] : memref<12x96xbf16, #tpu.memory_space<vmem>>, vector<1x64xbf16>
    tpu.vector_store %arg19[%c6_61, %c0_62], %46 {strides = array<i32>} : memref<12x96xbf16, #tpu.memory_space<vmem>>, vector<1x64xbf16>,
    %cst_63 = arith.constant 0.000000e+00 : bf16
    %48 = vector.broadcast %cst_63 : bf16 to vector<1x64xbf16>
    %c11_64 = arith.constant 11 : index
    %c0_65 = arith.constant 0 : index
    %49 = vector.load %arg19[%c11_64, %c0_65] : memref<12x96xbf16, #tpu.memory_space<vmem>>, vector<1x64xbf16>
    tpu.vector_store %arg19[%c11_64, %c0_65], %48 {strides = array<i32>} : memref<12x96xbf16, #tpu.memory_space<vmem>>, vector<1x64xbf16>,
    %cst_66 = arith.constant 0.000000e+00 : f32
    %50 = vector.broadcast %cst_66 : f32 to vector<12x32xf32>
    %c0_67 = arith.constant 0 : index
    %c64_68 = arith.constant 64 : index
    %51 = vector.load %arg20[%c0_67, %c64_68] : memref<12x96xf32, #tpu.memory_space<vmem>>, vector<12x32xf32>
    tpu.vector_store %arg20[%c0_67, %c64_68], %50 {strides = array<i32>} : memref<12x96xf32, #tpu.memory_space<vmem>>, vector<12x32xf32>,
    %cst_69 = arith.constant 0.000000e+00 : f32
    %52 = vector.broadcast %cst_69 : f32 to vector<1x64xf32>
    %c0_70 = arith.constant 0 : index
    %c0_71 = arith.constant 0 : index
    %53 = vector.load %arg20[%c0_70, %c0_71] : memref<12x96xf32, #tpu.memory_space<vmem>>, vector<1x64xf32>
    tpu.vector_store %arg20[%c0_70, %c0_71], %52 {strides = array<i32>} : memref<12x96xf32, #tpu.memory_space<vmem>>, vector<1x64xf32>,
    %cst_72 = arith.constant 0.000000e+00 : f32
    %54 = vector.broadcast %cst_72 : f32 to vector<1x64xf32>
    %c5_73 = arith.constant 5 : index
    %c0_74 = arith.constant 0 : index
    %55 = vector.load %arg20[%c5_73, %c0_74] : memref<12x96xf32, #tpu.memory_space<vmem>>, vector<1x64xf32>
    tpu.vector_store %arg20[%c5_73, %c0_74], %54 {strides = array<i32>} : memref<12x96xf32, #tpu.memory_space<vmem>>, vector<1x64xf32>,
    %cst_75 = arith.constant 0.000000e+00 : f32
    %56 = vector.broadcast %cst_75 : f32 to vector<1x64xf32>
    %c6_76 = arith.constant 6 : index
    %c0_77 = arith.constant 0 : index
    %57 = vector.load %arg20[%c6_76, %c0_77] : memref<12x96xf32, #tpu.memory_space<vmem>>, vector<1x64xf32>
    tpu.vector_store %arg20[%c6_76, %c0_77], %56 {strides = array<i32>} : memref<12x96xf32, #tpu.memory_space<vmem>>, vector<1x64xf32>,
    %cst_78 = arith.constant 0.000000e+00 : f32
    %58 = vector.broadcast %cst_78 : f32 to vector<1x64xf32>
    %c11_79 = arith.constant 11 : index
    %c0_80 = arith.constant 0 : index
    %59 = vector.load %arg20[%c11_79, %c0_80] : memref<12x96xf32, #tpu.memory_space<vmem>>, vector<1x64xf32>
    tpu.vector_store %arg20[%c11_79, %c0_80], %58 {strides = array<i32>} : memref<12x96xf32, #tpu.memory_space<vmem>>, vector<1x64xf32>,
    %cst_81 = arith.constant 0.000000e+00 : f32
    %60 = vector.broadcast %cst_81 : f32 to vector<17x64xf32>
    %c0_82 = arith.constant 0 : index
    %c0_83 = arith.constant 0 : index
    %61 = tpu.strided_load %arg1[%c0_82, %c0_83] {strides = array<i32: 2, 1>} : memref<36x72xf32, #tpu.memory_space<vmem>>, vector<17x72xf32>
    %62 = arith.truncf %61 : vector<17x72xf32> to vector<17x72xbf16>
    %c0_84 = arith.constant 0 : index
    %c0_85 = arith.constant 0 : index
    %c0_86 = arith.constant 0 : index
    %63 = vector.load %arg2[%c0_84, %c0_85, %c0_86] : memref<3x72x64xbf16, #tpu.memory_space<vmem>>, vector<1x72x64xbf16>
    %64 = vector.shape_cast %63 : vector<1x72x64xbf16> to vector<72x64xbf16>
    %cst_87 = arith.constant dense<0.000000e+00> : vector<17x64xf32>
    %65 = tpu.matmul %62, %64, %cst_87 {dimension_numbers = #tpu.dot_dimension_numbers<[1], [0], [0], [1], [0, 0, 1, 1], [], []>} : vector<17x72xbf16>, vector<72x64xbf16>, vector<17x64xf32> -> vector<17x64xf32>
    %66 = arith.addf %60, %65 : vector<17x64xf32>
    %c1 = arith.constant 1 : index
    %c0_88 = arith.constant 0 : index
    %67 = tpu.strided_load %arg1[%c1, %c0_88] {strides = array<i32: 2, 1>} : memref<36x72xf32, #tpu.memory_space<vmem>>, vector<17x72xf32>
    %68 = arith.truncf %67 : vector<17x72xf32> to vector<17x72xbf16>
    %c1_89 = arith.constant 1 : index
    %c0_90 = arith.constant 0 : index
    %c0_91 = arith.constant 0 : index
    %69 = vector.load %arg2[%c1_89, %c0_90, %c0_91] : memref<3x72x64xbf16, #tpu.memory_space<vmem>>, vector<1x72x64xbf16>
    %70 = vector.shape_cast %69 : vector<1x72x64xbf16> to vector<72x64xbf16>
    %cst_92 = arith.constant dense<0.000000e+00> : vector<17x64xf32>
    %71 = tpu.matmul %68, %70, %cst_92 {dimension_numbers = #tpu.dot_dimension_numbers<[1], [0], [0], [1], [0, 0, 1, 1], [], []>} : vector<17x72xbf16>, vector<72x64xbf16>, vector<17x64xf32> -> vector<17x64xf32>
    %72 = arith.addf %66, %71 : vector<17x64xf32>
    %c2 = arith.constant 2 : index
    %c0_93 = arith.constant 0 : index
    %73 = tpu.strided_load %arg1[%c2, %c0_93] {strides = array<i32: 2, 1>} : memref<36x72xf32, #tpu.memory_space<vmem>>, vector<17x72xf32>
    %74 = arith.truncf %73 : vector<17x72xf32> to vector<17x72xbf16>
    %c2_94 = arith.constant 2 : index
    %c0_95 = arith.constant 0 : index
    %c0_96 = arith.constant 0 : index
    %75 = vector.load %arg2[%c2_94, %c0_95, %c0_96] : memref<3x72x64xbf16, #tpu.memory_space<vmem>>, vector<1x72x64xbf16>
    %76 = vector.shape_cast %75 : vector<1x72x64xbf16> to vector<72x64xbf16>
    %cst_97 = arith.constant dense<0.000000e+00> : vector<17x64xf32>
    %77 = tpu.matmul %74, %76, %cst_97 {dimension_numbers = #tpu.dot_dimension_numbers<[1], [0], [0], [1], [0, 0, 1, 1], [], []>} : vector<17x72xbf16>, vector<72x64xbf16>, vector<17x64xf32> -> vector<17x64xf32>
    %78 = arith.addf %72, %77 : vector<17x64xf32>
    %c0_98 = arith.constant 0 : index
    %c0_99 = arith.constant 0 : index
    %79 = vector.load %arg9[%c0_98, %c0_99] : memref<7x64xf32, #tpu.memory_space<vmem>>, vector<1x64xf32>
    %80 = vector.broadcast %79 : vector<1x64xf32> to vector<17x64xf32>
    %81 = arith.addf %78, %80 : vector<17x64xf32>
    %82 = vector.extract_strided_slice %81 {offsets = [0, 0], sizes = [8, 64], strides = [1, 1]} : vector<17x64xf32> to vector<8x64xf32>
    %cst_100 = arith.constant 0.000000e+00 : f32
    %83 = vector.broadcast %cst_100 : f32 to vector<8x64xf32>
    %84 = arith.maximumf %82, %83 : vector<8x64xf32>
    %c0_101 = arith.constant 0 : index
    %c0_102 = arith.constant 0 : index
    %85 = vector.load %arg10[%c0_101, %c0_102] : memref<8x128xf32, #tpu.memory_space<vmem>>, vector<8x64xf32>
    tpu.vector_store %arg10[%c0_101, %c0_102], %84 {strides = array<i32>} : memref<8x128xf32, #tpu.memory_space<vmem>>, vector<8x64xf32>,
    %86 = arith.truncf %84 : vector<8x64xf32> to vector<8x64xbf16>
    %c1_103 = arith.constant 1 : index
    %c0_104 = arith.constant 0 : index
    %87 = vector.load %arg15[%c1_103, %c0_104] : memref<20x80xbf16, #tpu.memory_space<vmem>>, vector<8x64xbf16>
    tpu.vector_store %arg15[%c1_103, %c0_104], %86 {strides = array<i32>} : memref<20x80xbf16, #tpu.memory_space<vmem>>, vector<8x64xbf16>,
    %88 = vector.extract_strided_slice %81 {offsets = [9, 0], sizes = [8, 64], strides = [1, 1]} : vector<17x64xf32> to vector<8x64xf32>
    %cst_105 = arith.constant 0.000000e+00 : f32
    %89 = vector.broadcast %cst_105 : f32 to vector<8x64xf32>
    %90 = arith.maximumf %88, %89 : vector<8x64xf32>
    %c0_106 = arith.constant 0 : index
    %c64_107 = arith.constant 64 : index
    %91 = vector.load %arg10[%c0_106, %c64_107] : memref<8x128xf32, #tpu.memory_space<vmem>>, vector<8x64xf32>
    tpu.vector_store %arg10[%c0_106, %c64_107], %90 {strides = array<i32>} : memref<8x128xf32, #tpu.memory_space<vmem>>, vector<8x64xf32>,
    %92 = arith.truncf %90 : vector<8x64xf32> to vector<8x64xbf16>
    %c11_108 = arith.constant 11 : index
    %c0_109 = arith.constant 0 : index
    %93 = vector.load %arg15[%c11_108, %c0_109] : memref<20x80xbf16, #tpu.memory_space<vmem>>, vector<8x64xbf16>
    tpu.vector_store %arg15[%c11_108, %c0_109], %92 {strides = array<i32>} : memref<20x80xbf16, #tpu.memory_space<vmem>>, vector<8x64xbf16>,
    %cst_110 = arith.constant 0.000000e+00 : f32
    %94 = vector.broadcast %cst_110 : f32 to vector<18x64xf32>
    %c0_111 = arith.constant 0 : index
    %c0_112 = arith.constant 0 : index
    %95 = vector.load %arg15[%c0_111, %c0_112] : memref<20x80xbf16, #tpu.memory_space<vmem>>, vector<18x80xbf16>
    %c0_113 = arith.constant 0 : index
    %c0_114 = arith.constant 0 : index
    %c0_115 = arith.constant 0 : index
    %96 = vector.load %arg3[%c0_113, %c0_114, %c0_115] : memref<3x80x64xbf16, #tpu.memory_space<vmem>>, vector<1x80x64xbf16>
    %97 = vector.shape_cast %96 : vector<1x80x64xbf16> to vector<80x64xbf16>
    %cst_116 = arith.constant dense<0.000000e+00> : vector<18x64xf32>
    %98 = tpu.matmul %95, %97, %cst_116 {dimension_numbers = #tpu.dot_dimension_numbers<[1], [0], [0], [1], [0, 0, 1, 1], [], []>} : vector<18x80xbf16>, vector<80x64xbf16>, vector<18x64xf32> -> vector<18x64xf32>
    %99 = arith.addf %94, %98 : vector<18x64xf32>
    %c1_117 = arith.constant 1 : index
    %c0_118 = arith.constant 0 : index
    %100 = vector.load %arg15[%c1_117, %c0_118] : memref<20x80xbf16, #tpu.memory_space<vmem>>, vector<18x80xbf16>
    %c1_119 = arith.constant 1 : index
    %c0_120 = arith.constant 0 : index
    %c0_121 = arith.constant 0 : index
    %101 = vector.load %arg3[%c1_119, %c0_120, %c0_121] : memref<3x80x64xbf16, #tpu.memory_space<vmem>>, vector<1x80x64xbf16>
    %102 = vector.shape_cast %101 : vector<1x80x64xbf16> to vector<80x64xbf16>
    %cst_122 = arith.constant dense<0.000000e+00> : vector<18x64xf32>
    %103 = tpu.matmul %100, %102, %cst_122 {dimension_numbers = #tpu.dot_dimension_numbers<[1], [0], [0], [1], [0, 0, 1, 1], [], []>} : vector<18x80xbf16>, vector<80x64xbf16>, vector<18x64xf32> -> vector<18x64xf32>
    %104 = arith.addf %99, %103 : vector<18x64xf32>
    %c2_123 = arith.constant 2 : index
    %c0_124 = arith.constant 0 : index
    %105 = vector.load %arg15[%c2_123, %c0_124] : memref<20x80xbf16, #tpu.memory_space<vmem>>, vector<18x80xbf16>
    %c2_125 = arith.constant 2 : index
    %c0_126 = arith.constant 0 : index
    %c0_127 = arith.constant 0 : index
    %106 = vector.load %arg3[%c2_125, %c0_126, %c0_127] : memref<3x80x64xbf16, #tpu.memory_space<vmem>>, vector<1x80x64xbf16>
    %107 = vector.shape_cast %106 : vector<1x80x64xbf16> to vector<80x64xbf16>
    %cst_128 = arith.constant dense<0.000000e+00> : vector<18x64xf32>
    %108 = tpu.matmul %105, %107, %cst_128 {dimension_numbers = #tpu.dot_dimension_numbers<[1], [0], [0], [1], [0, 0, 1, 1], [], []>} : vector<18x80xbf16>, vector<80x64xbf16>, vector<18x64xf32> -> vector<18x64xf32>
    %109 = arith.addf %104, %108 : vector<18x64xf32>
    %c1_129 = arith.constant 1 : index
    %c0_130 = arith.constant 0 : index
    %110 = vector.load %arg9[%c1_129, %c0_130] : memref<7x64xf32, #tpu.memory_space<vmem>>, vector<1x64xf32>
    %111 = vector.broadcast %110 : vector<1x64xf32> to vector<18x64xf32>
    %112 = arith.addf %109, %111 : vector<18x64xf32>
    %113 = vector.extract_strided_slice %112 {offsets = [0, 0], sizes = [8, 64], strides = [1, 1]} : vector<18x64xf32> to vector<8x64xf32>
    %cst_131 = arith.constant 0.000000e+00 : f32
    %114 = vector.broadcast %cst_131 : f32 to vector<8x64xf32>
    %115 = arith.maximumf %113, %114 : vector<8x64xf32>
    %116 = arith.truncf %115 : vector<8x64xf32> to vector<8x64xbf16>
    %c1_132 = arith.constant 1 : index
    %c0_133 = arith.constant 0 : index
    %117 = vector.load %arg16[%c1_132, %c0_133] : memref<20x80xbf16, #tpu.memory_space<vmem>>, vector<8x64xbf16>
    tpu.vector_store %arg16[%c1_132, %c0_133], %116 {strides = array<i32>} : memref<20x80xbf16, #tpu.memory_space<vmem>>, vector<8x64xbf16>,
    %118 = vector.extract_strided_slice %112 {offsets = [10, 0], sizes = [8, 64], strides = [1, 1]} : vector<18x64xf32> to vector<8x64xf32>
    %cst_134 = arith.constant 0.000000e+00 : f32
    %119 = vector.broadcast %cst_134 : f32 to vector<8x64xf32>
    %120 = arith.maximumf %118, %119 : vector<8x64xf32>
    %121 = arith.truncf %120 : vector<8x64xf32> to vector<8x64xbf16>
    %c11_135 = arith.constant 11 : index
    %c0_136 = arith.constant 0 : index
    %122 = vector.load %arg16[%c11_135, %c0_136] : memref<20x80xbf16, #tpu.memory_space<vmem>>, vector<8x64xbf16>
    tpu.vector_store %arg16[%c11_135, %c0_136], %121 {strides = array<i32>} : memref<20x80xbf16, #tpu.memory_space<vmem>>, vector<8x64xbf16>,
    %cst_137 = arith.constant 0.000000e+00 : f32
    %123 = vector.broadcast %cst_137 : f32 to vector<18x64xf32>
    %c0_138 = arith.constant 0 : index
    %c0_139 = arith.constant 0 : index
    %124 = vector.load %arg16[%c0_138, %c0_139] : memref<20x80xbf16, #tpu.memory_space<vmem>>, vector<18x80xbf16>
    %c0_140 = arith.constant 0 : index
    %c0_141 = arith.constant 0 : index
    %c0_142 = arith.constant 0 : index
    %125 = vector.load %arg4[%c0_140, %c0_141, %c0_142] : memref<3x80x64xbf16, #tpu.memory_space<vmem>>, vector<1x80x64xbf16>
    %126 = vector.shape_cast %125 : vector<1x80x64xbf16> to vector<80x64xbf16>
    %cst_143 = arith.constant dense<0.000000e+00> : vector<18x64xf32>
    %127 = tpu.matmul %124, %126, %cst_143 {dimension_numbers = #tpu.dot_dimension_numbers<[1], [0], [0], [1], [0, 0, 1, 1], [], []>} : vector<18x80xbf16>, vector<80x64xbf16>, vector<18x64xf32> -> vector<18x64xf32>
    %128 = arith.addf %123, %127 : vector<18x64xf32>
    %c1_144 = arith.constant 1 : index
    %c0_145 = arith.constant 0 : index
    %129 = vector.load %arg16[%c1_144, %c0_145] : memref<20x80xbf16, #tpu.memory_space<vmem>>, vector<18x80xbf16>
    %c1_146 = arith.constant 1 : index
    %c0_147 = arith.constant 0 : index
    %c0_148 = arith.constant 0 : index
    %130 = vector.load %arg4[%c1_146, %c0_147, %c0_148] : memref<3x80x64xbf16, #tpu.memory_space<vmem>>, vector<1x80x64xbf16>
    %131 = vector.shape_cast %130 : vector<1x80x64xbf16> to vector<80x64xbf16>
    %cst_149 = arith.constant dense<0.000000e+00> : vector<18x64xf32>
    %132 = tpu.matmul %129, %131, %cst_149 {dimension_numbers = #tpu.dot_dimension_numbers<[1], [0], [0], [1], [0, 0, 1, 1], [], []>} : vector<18x80xbf16>, vector<80x64xbf16>, vector<18x64xf32> -> vector<18x64xf32>
    %133 = arith.addf %128, %132 : vector<18x64xf32>
    %c2_150 = arith.constant 2 : index
    %c0_151 = arith.constant 0 : index
    %134 = vector.load %arg16[%c2_150, %c0_151] : memref<20x80xbf16, #tpu.memory_space<vmem>>, vector<18x80xbf16>
    %c2_152 = arith.constant 2 : index
    %c0_153 = arith.constant 0 : index
    %c0_154 = arith.constant 0 : index
    %135 = vector.load %arg4[%c2_152, %c0_153, %c0_154] : memref<3x80x64xbf16, #tpu.memory_space<vmem>>, vector<1x80x64xbf16>
    %136 = vector.shape_cast %135 : vector<1x80x64xbf16> to vector<80x64xbf16>
    %cst_155 = arith.constant dense<0.000000e+00> : vector<18x64xf32>
    %137 = tpu.matmul %134, %136, %cst_155 {dimension_numbers = #tpu.dot_dimension_numbers<[1], [0], [0], [1], [0, 0, 1, 1], [], []>} : vector<18x80xbf16>, vector<80x64xbf16>, vector<18x64xf32> -> vector<18x64xf32>
    %138 = arith.addf %133, %137 : vector<18x64xf32>
    %c2_156 = arith.constant 2 : index
    %c0_157 = arith.constant 0 : index
    %139 = vector.load %arg9[%c2_156, %c0_157] : memref<7x64xf32, #tpu.memory_space<vmem>>, vector<1x64xf32>
    %140 = vector.broadcast %139 : vector<1x64xf32> to vector<18x64xf32>
    %141 = arith.addf %138, %140 : vector<18x64xf32>
    %142 = vector.extract_strided_slice %141 {offsets = [0, 0], sizes = [8, 64], strides = [1, 1]} : vector<18x64xf32> to vector<8x64xf32>
    %c1_158 = arith.constant 1 : index
    %c0_159 = arith.constant 0 : index
    %143 = vector.load %arg15[%c1_158, %c0_159] : memref<20x80xbf16, #tpu.memory_space<vmem>>, vector<8x64xbf16>
    %144 = arith.extf %143 : vector<8x64xbf16> to vector<8x64xf32>
    %145 = arith.addf %142, %144 : vector<8x64xf32>
    %cst_160 = arith.constant 0.000000e+00 : f32
    %146 = vector.broadcast %cst_160 : f32 to vector<8x64xf32>
    %147 = arith.maximumf %145, %146 : vector<8x64xf32>
    %c0_161 = arith.constant 0 : index
    %c0_162 = arith.constant 0 : index
    %148 = vector.load %arg11[%c0_161, %c0_162] : memref<8x128xf32, #tpu.memory_space<vmem>>, vector<8x64xf32>
    tpu.vector_store %arg11[%c0_161, %c0_162], %147 {strides = array<i32>} : memref<8x128xf32, #tpu.memory_space<vmem>>, vector<8x64xf32>,
    %c1_163 = arith.constant 1 : index
    %c0_164 = arith.constant 0 : index
    %149 = vector.load %arg17[%c1_163, %c0_164] : memref<20x80xf32, #tpu.memory_space<vmem>>, vector<8x64xf32>
    tpu.vector_store %arg17[%c1_163, %c0_164], %147 {strides = array<i32>} : memref<20x80xf32, #tpu.memory_space<vmem>>, vector<8x64xf32>,
    %150 = vector.extract_strided_slice %141 {offsets = [10, 0], sizes = [8, 64], strides = [1, 1]} : vector<18x64xf32> to vector<8x64xf32>
    %c11_165 = arith.constant 11 : index
    %c0_166 = arith.constant 0 : index
    %151 = vector.load %arg15[%c11_165, %c0_166] : memref<20x80xbf16, #tpu.memory_space<vmem>>, vector<8x64xbf16>
    %152 = arith.extf %151 : vector<8x64xbf16> to vector<8x64xf32>
    %153 = arith.addf %150, %152 : vector<8x64xf32>
    %cst_167 = arith.constant 0.000000e+00 : f32
    %154 = vector.broadcast %cst_167 : f32 to vector<8x64xf32>
    %155 = arith.maximumf %153, %154 : vector<8x64xf32>
    %c0_168 = arith.constant 0 : index
    %c64_169 = arith.constant 64 : index
    %156 = vector.load %arg11[%c0_168, %c64_169] : memref<8x128xf32, #tpu.memory_space<vmem>>, vector<8x64xf32>
    tpu.vector_store %arg11[%c0_168, %c64_169], %155 {strides = array<i32>} : memref<8x128xf32, #tpu.memory_space<vmem>>, vector<8x64xf32>,
    %c11_170 = arith.constant 11 : index
    %c0_171 = arith.constant 0 : index
    %157 = vector.load %arg17[%c11_170, %c0_171] : memref<20x80xf32, #tpu.memory_space<vmem>>, vector<8x64xf32>
    tpu.vector_store %arg17[%c11_170, %c0_171], %155 {strides = array<i32>} : memref<20x80xf32, #tpu.memory_space<vmem>>, vector<8x64xf32>,
    %cst_172 = arith.constant 0.000000e+00 : f32
    %158 = vector.broadcast %cst_172 : f32 to vector<9x64xf32>
    %c0_173 = arith.constant 0 : index
    %c0_174 = arith.constant 0 : index
    %159 = tpu.strided_load %arg17[%c0_173, %c0_174] {strides = array<i32: 2, 1>} : memref<20x80xf32, #tpu.memory_space<vmem>>, vector<9x80xf32>
    %160 = arith.truncf %159 : vector<9x80xf32> to vector<9x80xbf16>
    %c0_175 = arith.constant 0 : index
    %c0_176 = arith.constant 0 : index
    %c0_177 = arith.constant 0 : index
    %161 = vector.load %arg5[%c0_175, %c0_176, %c0_177] : memref<3x80x64xbf16, #tpu.memory_space<vmem>>, vector<1x80x64xbf16>
    %162 = vector.shape_cast %161 : vector<1x80x64xbf16> to vector<80x64xbf16>
    %cst_178 = arith.constant dense<0.000000e+00> : vector<9x64xf32>
    %163 = tpu.matmul %160, %162, %cst_178 {dimension_numbers = #tpu.dot_dimension_numbers<[1], [0], [0], [1], [0, 0, 1, 1], [], []>} : vector<9x80xbf16>, vector<80x64xbf16>, vector<9x64xf32> -> vector<9x64xf32>
    %164 = arith.addf %158, %163 : vector<9x64xf32>
    %c1_179 = arith.constant 1 : index
    %c0_180 = arith.constant 0 : index
    %165 = tpu.strided_load %arg17[%c1_179, %c0_180] {strides = array<i32: 2, 1>} : memref<20x80xf32, #tpu.memory_space<vmem>>, vector<9x80xf32>
    %166 = arith.truncf %165 : vector<9x80xf32> to vector<9x80xbf16>
    %c1_181 = arith.constant 1 : index
    %c0_182 = arith.constant 0 : index
    %c0_183 = arith.constant 0 : index
    %167 = vector.load %arg5[%c1_181, %c0_182, %c0_183] : memref<3x80x64xbf16, #tpu.memory_space<vmem>>, vector<1x80x64xbf16>
    %168 = vector.shape_cast %167 : vector<1x80x64xbf16> to vector<80x64xbf16>
    %cst_184 = arith.constant dense<0.000000e+00> : vector<9x64xf32>
    %169 = tpu.matmul %166, %168, %cst_184 {dimension_numbers = #tpu.dot_dimension_numbers<[1], [0], [0], [1], [0, 0, 1, 1], [], []>} : vector<9x80xbf16>, vector<80x64xbf16>, vector<9x64xf32> -> vector<9x64xf32>
    %170 = arith.addf %164, %169 : vector<9x64xf32>
    %c2_185 = arith.constant 2 : index
    %c0_186 = arith.constant 0 : index
    %171 = tpu.strided_load %arg17[%c2_185, %c0_186] {strides = array<i32: 2, 1>} : memref<20x80xf32, #tpu.memory_space<vmem>>, vector<9x80xf32>
    %172 = arith.truncf %171 : vector<9x80xf32> to vector<9x80xbf16>
    %c2_187 = arith.constant 2 : index
    %c0_188 = arith.constant 0 : index
    %c0_189 = arith.constant 0 : index
    %173 = vector.load %arg5[%c2_187, %c0_188, %c0_189] : memref<3x80x64xbf16, #tpu.memory_space<vmem>>, vector<1x80x64xbf16>
    %174 = vector.shape_cast %173 : vector<1x80x64xbf16> to vector<80x64xbf16>
    %cst_190 = arith.constant dense<0.000000e+00> : vector<9x64xf32>
    %175 = tpu.matmul %172, %174, %cst_190 {dimension_numbers = #tpu.dot_dimension_numbers<[1], [0], [0], [1], [0, 0, 1, 1], [], []>} : vector<9x80xbf16>, vector<80x64xbf16>, vector<9x64xf32> -> vector<9x64xf32>
    %176 = arith.addf %170, %175 : vector<9x64xf32>
    %c3 = arith.constant 3 : index
    %c0_191 = arith.constant 0 : index
    %177 = vector.load %arg9[%c3, %c0_191] : memref<7x64xf32, #tpu.memory_space<vmem>>, vector<1x64xf32>
    %178 = vector.broadcast %177 : vector<1x64xf32> to vector<9x64xf32>
    %179 = arith.addf %176, %178 : vector<9x64xf32>
    %180 = vector.extract_strided_slice %179 {offsets = [0, 0], sizes = [4, 64], strides = [1, 1]} : vector<9x64xf32> to vector<4x64xf32>
    %cst_192 = arith.constant 0.000000e+00 : f32
    %181 = vector.broadcast %cst_192 : f32 to vector<4x64xf32>
    %182 = arith.maximumf %180, %181 : vector<4x64xf32>
    %c0_193 = arith.constant 0 : index
    %c0_194 = arith.constant 0 : index
    %183 = vector.load %arg12[%c0_193, %c0_194] : memref<4x128xf32, #tpu.memory_space<vmem>>, vector<4x64xf32>
    tpu.vector_store %arg12[%c0_193, %c0_194], %182 {strides = array<i32>} : memref<4x128xf32, #tpu.memory_space<vmem>>, vector<4x64xf32>,
    %184 = arith.truncf %182 : vector<4x64xf32> to vector<4x64xbf16>
    %c1_195 = arith.constant 1 : index
    %c0_196 = arith.constant 0 : index
    %185 = vector.load %arg18[%c1_195, %c0_196] : memref<12x96xbf16, #tpu.memory_space<vmem>>, vector<4x64xbf16>
    tpu.vector_store %arg18[%c1_195, %c0_196], %184 {strides = array<i32>} : memref<12x96xbf16, #tpu.memory_space<vmem>>, vector<4x64xbf16>,
    %186 = vector.extract_strided_slice %179 {offsets = [5, 0], sizes = [4, 64], strides = [1, 1]} : vector<9x64xf32> to vector<4x64xf32>
    %cst_197 = arith.constant 0.000000e+00 : f32
    %187 = vector.broadcast %cst_197 : f32 to vector<4x64xf32>
    %188 = arith.maximumf %186, %187 : vector<4x64xf32>
    %c0_198 = arith.constant 0 : index
    %c64_199 = arith.constant 64 : index
    %189 = vector.load %arg12[%c0_198, %c64_199] : memref<4x128xf32, #tpu.memory_space<vmem>>, vector<4x64xf32>
    tpu.vector_store %arg12[%c0_198, %c64_199], %188 {strides = array<i32>} : memref<4x128xf32, #tpu.memory_space<vmem>>, vector<4x64xf32>,
    %190 = arith.truncf %188 : vector<4x64xf32> to vector<4x64xbf16>
    %c7 = arith.constant 7 : index
    %c0_200 = arith.constant 0 : index
    %191 = vector.load %arg18[%c7, %c0_200] : memref<12x96xbf16, #tpu.memory_space<vmem>>, vector<4x64xbf16>
    tpu.vector_store %arg18[%c7, %c0_200], %190 {strides = array<i32>} : memref<12x96xbf16, #tpu.memory_space<vmem>>, vector<4x64xbf16>,
    %cst_201 = arith.constant 0.000000e+00 : f32
    %192 = vector.broadcast %cst_201 : f32 to vector<10x64xf32>
    %c0_202 = arith.constant 0 : index
    %c0_203 = arith.constant 0 : index
    %193 = vector.load %arg18[%c0_202, %c0_203] : memref<12x96xbf16, #tpu.memory_space<vmem>>, vector<10x96xbf16>
    %c0_204 = arith.constant 0 : index
    %c0_205 = arith.constant 0 : index
    %c0_206 = arith.constant 0 : index
    %194 = vector.load %arg6[%c0_204, %c0_205, %c0_206] : memref<3x96x64xbf16, #tpu.memory_space<vmem>>, vector<1x96x64xbf16>
    %195 = vector.shape_cast %194 : vector<1x96x64xbf16> to vector<96x64xbf16>
    %cst_207 = arith.constant dense<0.000000e+00> : vector<10x64xf32>
    %196 = tpu.matmul %193, %195, %cst_207 {dimension_numbers = #tpu.dot_dimension_numbers<[1], [0], [0], [1], [0, 0, 1, 1], [], []>} : vector<10x96xbf16>, vector<96x64xbf16>, vector<10x64xf32> -> vector<10x64xf32>
    %197 = arith.addf %192, %196 : vector<10x64xf32>
    %c1_208 = arith.constant 1 : index
    %c0_209 = arith.constant 0 : index
    %198 = vector.load %arg18[%c1_208, %c0_209] : memref<12x96xbf16, #tpu.memory_space<vmem>>, vector<10x96xbf16>
    %c1_210 = arith.constant 1 : index
    %c0_211 = arith.constant 0 : index
    %c0_212 = arith.constant 0 : index
    %199 = vector.load %arg6[%c1_210, %c0_211, %c0_212] : memref<3x96x64xbf16, #tpu.memory_space<vmem>>, vector<1x96x64xbf16>
    %200 = vector.shape_cast %199 : vector<1x96x64xbf16> to vector<96x64xbf16>
    %cst_213 = arith.constant dense<0.000000e+00> : vector<10x64xf32>
    %201 = tpu.matmul %198, %200, %cst_213 {dimension_numbers = #tpu.dot_dimension_numbers<[1], [0], [0], [1], [0, 0, 1, 1], [], []>} : vector<10x96xbf16>, vector<96x64xbf16>, vector<10x64xf32> -> vector<10x64xf32>
    %202 = arith.addf %197, %201 : vector<10x64xf32>
    %c2_214 = arith.constant 2 : index
    %c0_215 = arith.constant 0 : index
    %203 = vector.load %arg18[%c2_214, %c0_215] : memref<12x96xbf16, #tpu.memory_space<vmem>>, vector<10x96xbf16>
    %c2_216 = arith.constant 2 : index
    %c0_217 = arith.constant 0 : index
    %c0_218 = arith.constant 0 : index
    %204 = vector.load %arg6[%c2_216, %c0_217, %c0_218] : memref<3x96x64xbf16, #tpu.memory_space<vmem>>, vector<1x96x64xbf16>
    %205 = vector.shape_cast %204 : vector<1x96x64xbf16> to vector<96x64xbf16>
    %cst_219 = arith.constant dense<0.000000e+00> : vector<10x64xf32>
    %206 = tpu.matmul %203, %205, %cst_219 {dimension_numbers = #tpu.dot_dimension_numbers<[1], [0], [0], [1], [0, 0, 1, 1], [], []>} : vector<10x96xbf16>, vector<96x64xbf16>, vector<10x64xf32> -> vector<10x64xf32>
    %207 = arith.addf %202, %206 : vector<10x64xf32>
    %c4 = arith.constant 4 : index
    %c0_220 = arith.constant 0 : index
    %208 = vector.load %arg9[%c4, %c0_220] : memref<7x64xf32, #tpu.memory_space<vmem>>, vector<1x64xf32>
    %209 = vector.broadcast %208 : vector<1x64xf32> to vector<10x64xf32>
    %210 = arith.addf %207, %209 : vector<10x64xf32>
    %211 = vector.extract_strided_slice %210 {offsets = [0, 0], sizes = [4, 64], strides = [1, 1]} : vector<10x64xf32> to vector<4x64xf32>
    %cst_221 = arith.constant 0.000000e+00 : f32
    %212 = vector.broadcast %cst_221 : f32 to vector<4x64xf32>
    %213 = arith.maximumf %211, %212 : vector<4x64xf32>
    %214 = arith.truncf %213 : vector<4x64xf32> to vector<4x64xbf16>
    %c1_222 = arith.constant 1 : index
    %c0_223 = arith.constant 0 : index
    %215 = vector.load %arg19[%c1_222, %c0_223] : memref<12x96xbf16, #tpu.memory_space<vmem>>, vector<4x64xbf16>
    tpu.vector_store %arg19[%c1_222, %c0_223], %214 {strides = array<i32>} : memref<12x96xbf16, #tpu.memory_space<vmem>>, vector<4x64xbf16>,
    %216 = vector.extract_strided_slice %210 {offsets = [6, 0], sizes = [4, 64], strides = [1, 1]} : vector<10x64xf32> to vector<4x64xf32>
    %cst_224 = arith.constant 0.000000e+00 : f32
    %217 = vector.broadcast %cst_224 : f32 to vector<4x64xf32>
    %218 = arith.maximumf %216, %217 : vector<4x64xf32>
    %219 = arith.truncf %218 : vector<4x64xf32> to vector<4x64xbf16>
    %c7_225 = arith.constant 7 : index
    %c0_226 = arith.constant 0 : index
    %220 = vector.load %arg19[%c7_225, %c0_226] : memref<12x96xbf16, #tpu.memory_space<vmem>>, vector<4x64xbf16>
    tpu.vector_store %arg19[%c7_225, %c0_226], %219 {strides = array<i32>} : memref<12x96xbf16, #tpu.memory_space<vmem>>, vector<4x64xbf16>,
    %cst_227 = arith.constant 0.000000e+00 : f32
    %221 = vector.broadcast %cst_227 : f32 to vector<10x64xf32>
    %c0_228 = arith.constant 0 : index
    %c0_229 = arith.constant 0 : index
    %222 = vector.load %arg19[%c0_228, %c0_229] : memref<12x96xbf16, #tpu.memory_space<vmem>>, vector<10x96xbf16>
    %c0_230 = arith.constant 0 : index
    %c0_231 = arith.constant 0 : index
    %c0_232 = arith.constant 0 : index
    %223 = vector.load %arg7[%c0_230, %c0_231, %c0_232] : memref<3x96x64xbf16, #tpu.memory_space<vmem>>, vector<1x96x64xbf16>
    %224 = vector.shape_cast %223 : vector<1x96x64xbf16> to vector<96x64xbf16>
    %cst_233 = arith.constant dense<0.000000e+00> : vector<10x64xf32>
    %225 = tpu.matmul %222, %224, %cst_233 {dimension_numbers = #tpu.dot_dimension_numbers<[1], [0], [0], [1], [0, 0, 1, 1], [], []>} : vector<10x96xbf16>, vector<96x64xbf16>, vector<10x64xf32> -> vector<10x64xf32>
    %226 = arith.addf %221, %225 : vector<10x64xf32>
    %c1_234 = arith.constant 1 : index
    %c0_235 = arith.constant 0 : index
    %227 = vector.load %arg19[%c1_234, %c0_235] : memref<12x96xbf16, #tpu.memory_space<vmem>>, vector<10x96xbf16>
    %c1_236 = arith.constant 1 : index
    %c0_237 = arith.constant 0 : index
    %c0_238 = arith.constant 0 : index
    %228 = vector.load %arg7[%c1_236, %c0_237, %c0_238] : memref<3x96x64xbf16, #tpu.memory_space<vmem>>, vector<1x96x64xbf16>
    %229 = vector.shape_cast %228 : vector<1x96x64xbf16> to vector<96x64xbf16>
    %cst_239 = arith.constant dense<0.000000e+00> : vector<10x64xf32>
    %230 = tpu.matmul %227, %229, %cst_239 {dimension_numbers = #tpu.dot_dimension_numbers<[1], [0], [0], [1], [0, 0, 1, 1], [], []>} : vector<10x96xbf16>, vector<96x64xbf16>, vector<10x64xf32> -> vector<10x64xf32>
    %231 = arith.addf %226, %230 : vector<10x64xf32>
    %c2_240 = arith.constant 2 : index
    %c0_241 = arith.constant 0 : index
    %232 = vector.load %arg19[%c2_240, %c0_241] : memref<12x96xbf16, #tpu.memory_space<vmem>>, vector<10x96xbf16>
    %c2_242 = arith.constant 2 : index
    %c0_243 = arith.constant 0 : index
    %c0_244 = arith.constant 0 : index
    %233 = vector.load %arg7[%c2_242, %c0_243, %c0_244] : memref<3x96x64xbf16, #tpu.memory_space<vmem>>, vector<1x96x64xbf16>
    %234 = vector.shape_cast %233 : vector<1x96x64xbf16> to vector<96x64xbf16>
    %cst_245 = arith.constant dense<0.000000e+00> : vector<10x64xf32>
    %235 = tpu.matmul %232, %234, %cst_245 {dimension_numbers = #tpu.dot_dimension_numbers<[1], [0], [0], [1], [0, 0, 1, 1], [], []>} : vector<10x96xbf16>, vector<96x64xbf16>, vector<10x64xf32> -> vector<10x64xf32>
    %236 = arith.addf %231, %235 : vector<10x64xf32>
    %c5_246 = arith.constant 5 : index
    %c0_247 = arith.constant 0 : index
    %237 = vector.load %arg9[%c5_246, %c0_247] : memref<7x64xf32, #tpu.memory_space<vmem>>, vector<1x64xf32>
    %238 = vector.broadcast %237 : vector<1x64xf32> to vector<10x64xf32>
    %239 = arith.addf %236, %238 : vector<10x64xf32>
    %240 = vector.extract_strided_slice %239 {offsets = [0, 0], sizes = [4, 64], strides = [1, 1]} : vector<10x64xf32> to vector<4x64xf32>
    %c1_248 = arith.constant 1 : index
    %c0_249 = arith.constant 0 : index
    %241 = vector.load %arg18[%c1_248, %c0_249] : memref<12x96xbf16, #tpu.memory_space<vmem>>, vector<4x64xbf16>
    %242 = arith.extf %241 : vector<4x64xbf16> to vector<4x64xf32>
    %243 = arith.addf %240, %242 : vector<4x64xf32>
    %cst_250 = arith.constant 0.000000e+00 : f32
    %244 = vector.broadcast %cst_250 : f32 to vector<4x64xf32>
    %245 = arith.maximumf %243, %244 : vector<4x64xf32>
    %c0_251 = arith.constant 0 : index
    %c0_252 = arith.constant 0 : index
    %246 = vector.load %arg13[%c0_251, %c0_252] : memref<4x128xf32, #tpu.memory_space<vmem>>, vector<4x64xf32>
    tpu.vector_store %arg13[%c0_251, %c0_252], %245 {strides = array<i32>} : memref<4x128xf32, #tpu.memory_space<vmem>>, vector<4x64xf32>,
    %c1_253 = arith.constant 1 : index
    %c0_254 = arith.constant 0 : index
    %247 = vector.load %arg20[%c1_253, %c0_254] : memref<12x96xf32, #tpu.memory_space<vmem>>, vector<4x64xf32>
    tpu.vector_store %arg20[%c1_253, %c0_254], %245 {strides = array<i32>} : memref<12x96xf32, #tpu.memory_space<vmem>>, vector<4x64xf32>,
    %248 = vector.extract_strided_slice %239 {offsets = [6, 0], sizes = [4, 64], strides = [1, 1]} : vector<10x64xf32> to vector<4x64xf32>
    %c7_255 = arith.constant 7 : index
    %c0_256 = arith.constant 0 : index
    %249 = vector.load %arg18[%c7_255, %c0_256] : memref<12x96xbf16, #tpu.memory_space<vmem>>, vector<4x64xbf16>
    %250 = arith.extf %249 : vector<4x64xbf16> to vector<4x64xf32>
    %251 = arith.addf %248, %250 : vector<4x64xf32>
    %cst_257 = arith.constant 0.000000e+00 : f32
    %252 = vector.broadcast %cst_257 : f32 to vector<4x64xf32>
    %253 = arith.maximumf %251, %252 : vector<4x64xf32>
    %c0_258 = arith.constant 0 : index
    %c64_259 = arith.constant 64 : index
    %254 = vector.load %arg13[%c0_258, %c64_259] : memref<4x128xf32, #tpu.memory_space<vmem>>, vector<4x64xf32>
    tpu.vector_store %arg13[%c0_258, %c64_259], %253 {strides = array<i32>} : memref<4x128xf32, #tpu.memory_space<vmem>>, vector<4x64xf32>,
    %c7_260 = arith.constant 7 : index
    %c0_261 = arith.constant 0 : index
    %255 = vector.load %arg20[%c7_260, %c0_261] : memref<12x96xf32, #tpu.memory_space<vmem>>, vector<4x64xf32>
    tpu.vector_store %arg20[%c7_260, %c0_261], %253 {strides = array<i32>} : memref<12x96xf32, #tpu.memory_space<vmem>>, vector<4x64xf32>,
    %cst_262 = arith.constant 0.000000e+00 : f32
    %256 = vector.broadcast %cst_262 : f32 to vector<5x64xf32>
    %c0_263 = arith.constant 0 : index
    %c0_264 = arith.constant 0 : index
    %257 = tpu.strided_load %arg20[%c0_263, %c0_264] {strides = array<i32: 2, 1>} : memref<12x96xf32, #tpu.memory_space<vmem>>, vector<5x96xf32>
    %258 = arith.truncf %257 : vector<5x96xf32> to vector<5x96xbf16>
    %c0_265 = arith.constant 0 : index
    %c0_266 = arith.constant 0 : index
    %c0_267 = arith.constant 0 : index
    %259 = vector.load %arg8[%c0_265, %c0_266, %c0_267] : memref<3x96x64xbf16, #tpu.memory_space<vmem>>, vector<1x96x64xbf16>
    %260 = vector.shape_cast %259 : vector<1x96x64xbf16> to vector<96x64xbf16>
    %cst_268 = arith.constant dense<0.000000e+00> : vector<5x64xf32>
    %261 = tpu.matmul %258, %260, %cst_268 {dimension_numbers = #tpu.dot_dimension_numbers<[1], [0], [0], [1], [0, 0, 1, 1], [], []>} : vector<5x96xbf16>, vector<96x64xbf16>, vector<5x64xf32> -> vector<5x64xf32>
    %262 = arith.addf %256, %261 : vector<5x64xf32>
    %c1_269 = arith.constant 1 : index
    %c0_270 = arith.constant 0 : index
    %263 = tpu.strided_load %arg20[%c1_269, %c0_270] {strides = array<i32: 2, 1>} : memref<12x96xf32, #tpu.memory_space<vmem>>, vector<5x96xf32>
    %264 = arith.truncf %263 : vector<5x96xf32> to vector<5x96xbf16>
    %c1_271 = arith.constant 1 : index
    %c0_272 = arith.constant 0 : index
    %c0_273 = arith.constant 0 : index
    %265 = vector.load %arg8[%c1_271, %c0_272, %c0_273] : memref<3x96x64xbf16, #tpu.memory_space<vmem>>, vector<1x96x64xbf16>
    %266 = vector.shape_cast %265 : vector<1x96x64xbf16> to vector<96x64xbf16>
    %cst_274 = arith.constant dense<0.000000e+00> : vector<5x64xf32>
    %267 = tpu.matmul %264, %266, %cst_274 {dimension_numbers = #tpu.dot_dimension_numbers<[1], [0], [0], [1], [0, 0, 1, 1], [], []>} : vector<5x96xbf16>, vector<96x64xbf16>, vector<5x64xf32> -> vector<5x64xf32>
    %268 = arith.addf %262, %267 : vector<5x64xf32>
    %c2_275 = arith.constant 2 : index
    %c0_276 = arith.constant 0 : index
    %269 = tpu.strided_load %arg20[%c2_275, %c0_276] {strides = array<i32: 2, 1>} : memref<12x96xf32, #tpu.memory_space<vmem>>, vector<5x96xf32>
    %270 = arith.truncf %269 : vector<5x96xf32> to vector<5x96xbf16>
    %c2_277 = arith.constant 2 : index
    %c0_278 = arith.constant 0 : index
    %c0_279 = arith.constant 0 : index
    %271 = vector.load %arg8[%c2_277, %c0_278, %c0_279] : memref<3x96x64xbf16, #tpu.memory_space<vmem>>, vector<1x96x64xbf16>
    %272 = vector.shape_cast %271 : vector<1x96x64xbf16> to vector<96x64xbf16>
    %cst_280 = arith.constant dense<0.000000e+00> : vector<5x64xf32>
    %273 = tpu.matmul %270, %272, %cst_280 {dimension_numbers = #tpu.dot_dimension_numbers<[1], [0], [0], [1], [0, 0, 1, 1], [], []>} : vector<5x96xbf16>, vector<96x64xbf16>, vector<5x64xf32> -> vector<5x64xf32>
    %274 = arith.addf %268, %273 : vector<5x64xf32>
    %c6_281 = arith.constant 6 : index
    %c0_282 = arith.constant 0 : index
    %275 = vector.load %arg9[%c6_281, %c0_282] : memref<7x64xf32, #tpu.memory_space<vmem>>, vector<1x64xf32>
    %276 = vector.broadcast %275 : vector<1x64xf32> to vector<5x64xf32>
    %277 = arith.addf %274, %276 : vector<5x64xf32>
    %278 = vector.extract_strided_slice %277 {offsets = [0, 0], sizes = [2, 64], strides = [1, 1]} : vector<5x64xf32> to vector<2x64xf32>
    %cst_283 = arith.constant 0.000000e+00 : f32
    %279 = vector.broadcast %cst_283 : f32 to vector<2x64xf32>
    %280 = arith.maximumf %278, %279 : vector<2x64xf32>
    %c0_284 = arith.constant 0 : index
    %c0_285 = arith.constant 0 : index
    %281 = vector.load %arg14[%c0_284, %c0_285] : memref<2x128xf32, #tpu.memory_space<vmem>>, vector<2x64xf32>
    tpu.vector_store %arg14[%c0_284, %c0_285], %280 {strides = array<i32>} : memref<2x128xf32, #tpu.memory_space<vmem>>, vector<2x64xf32>,
    %282 = vector.extract_strided_slice %277 {offsets = [3, 0], sizes = [2, 64], strides = [1, 1]} : vector<5x64xf32> to vector<2x64xf32>
    %cst_286 = arith.constant 0.000000e+00 : f32
    %283 = vector.broadcast %cst_286 : f32 to vector<2x64xf32>
    %284 = arith.maximumf %282, %283 : vector<2x64xf32>
    %c0_287 = arith.constant 0 : index
    %c64_288 = arith.constant 64 : index
    %285 = vector.load %arg14[%c0_287, %c64_288] : memref<2x128xf32, #tpu.memory_space<vmem>>, vector<2x64xf32>
    tpu.vector_store %arg14[%c0_287, %c64_288], %284 {strides = array<i32>} : memref<2x128xf32, #tpu.memory_space<vmem>>, vector<2x64xf32>,
    return
  }
  func.func @transform_0(%arg0: i32) -> (i32, i32) {
    %c0_i32 = arith.constant 0 : i32
    %c0_i32_0 = arith.constant 0 : i32
    %c0_i32_1 = arith.constant 0 : i32
    return %c0_i32, %c0_i32_0 : i32, i32
  }
  func.func @transform_1(%arg0: i32) -> (i32, i32, i32) {
    %c0_i32 = arith.constant 0 : i32
    %c0_i32_0 = arith.constant 0 : i32
    %c0_i32_1 = arith.constant 0 : i32
    %c0_i32_2 = arith.constant 0 : i32
    return %c0_i32, %c0_i32_0, %c0_i32_1 : i32, i32, i32
  }
  func.func @transform_2(%arg0: i32) -> (i32, i32, i32) {
    %c0_i32 = arith.constant 0 : i32
    %c0_i32_0 = arith.constant 0 : i32
    %c0_i32_1 = arith.constant 0 : i32
    %c0_i32_2 = arith.constant 0 : i32
    return %c0_i32, %c0_i32_0, %c0_i32_1 : i32, i32, i32
  }
  func.func @transform_3(%arg0: i32) -> (i32, i32, i32) {
    %c0_i32 = arith.constant 0 : i32
    %c0_i32_0 = arith.constant 0 : i32
    %c0_i32_1 = arith.constant 0 : i32
    %c0_i32_2 = arith.constant 0 : i32
    return %c0_i32, %c0_i32_0, %c0_i32_1 : i32, i32, i32
  }
  func.func @transform_4(%arg0: i32) -> (i32, i32, i32) {
    %c0_i32 = arith.constant 0 : i32
    %c0_i32_0 = arith.constant 0 : i32
    %c0_i32_1 = arith.constant 0 : i32
    %c0_i32_2 = arith.constant 0 : i32
    return %c0_i32, %c0_i32_0, %c0_i32_1 : i32, i32, i32
  }
  func.func @transform_5(%arg0: i32) -> (i32, i32, i32) {
    %c0_i32 = arith.constant 0 : i32
    %c0_i32_0 = arith.constant 0 : i32
    %c0_i32_1 = arith.constant 0 : i32
    %c0_i32_2 = arith.constant 0 : i32
    return %c0_i32, %c0_i32_0, %c0_i32_1 : i32, i32, i32
  }
  func.func @transform_6(%arg0: i32) -> (i32, i32, i32) {
    %c0_i32 = arith.constant 0 : i32
    %c0_i32_0 = arith.constant 0 : i32
    %c0_i32_1 = arith.constant 0 : i32
    %c0_i32_2 = arith.constant 0 : i32
    return %c0_i32, %c0_i32_0, %c0_i32_1 : i32, i32, i32
  }
  func.func @transform_7(%arg0: i32) -> (i32, i32, i32) {
    %c0_i32 = arith.constant 0 : i32
    %c0_i32_0 = arith.constant 0 : i32
    %c0_i32_1 = arith.constant 0 : i32
    %c0_i32_2 = arith.constant 0 : i32
    return %c0_i32, %c0_i32_0, %c0_i32_1 : i32, i32, i32
  }
  func.func @transform_8(%arg0: i32) -> (i32, i32) {
    %c0_i32 = arith.constant 0 : i32
    %c0_i32_0 = arith.constant 0 : i32
    %c0_i32_1 = arith.constant 0 : i32
    return %c0_i32, %c0_i32_0 : i32, i32
  }
  func.func @transform_9(%arg0: i32) -> (i32, i32) {
    %c0_i32 = arith.constant 0 : i32
    %c0_i32_0 = arith.constant 0 : i32
    %c0_i32_1 = arith.constant 0 : i32
    return %c0_i32, %c0_i32_0 : i32, i32
  }
  func.func @transform_10(%arg0: i32) -> (i32, i32) {
    %c0_i32 = arith.constant 0 : i32
    %c0_i32_0 = arith.constant 0 : i32
    %c0_i32_1 = arith.constant 0 : i32
    return %c0_i32, %c0_i32_0 : i32, i32
  }
  func.func @transform_11(%arg0: i32) -> (i32, i32) {
    %c0_i32 = arith.constant 0 : i32
    %c0_i32_0 = arith.constant 0 : i32
    %c0_i32_1 = arith.constant 0 : i32
    return %c0_i32, %c0_i32_0 : i32, i32
  }
  func.func @transform_12(%arg0: i32) -> (i32, i32) {
    %c0_i32 = arith.constant 0 : i32
    %c0_i32_0 = arith.constant 0 : i32
    %c0_i32_1 = arith.constant 0 : i32
    return %c0_i32, %c0_i32_0 : i32, i32
  }
  func.func @transform_13(%arg0: i32) -> (i32, i32) {
    %c0_i32 = arith.constant 0 : i32
    %c0_i32_0 = arith.constant 0 : i32
    %c0_i32_1 = arith.constant 0 : i32
    return %c0_i32, %c0_i32_0 : i32, i32
  }
}

</mosaic_0001>

<bundles_post_ra>
// kernel: tpu_custom_call.1
= control target key start
LH: loop header
LB: loop body
LE: loop exit
PB: predicated region body
PF: predicated region fallthrough
CT: control target
= control target key end

     0   :  { %19 = vsyncpa [#allocation9], 0  ;;  %s3638_s0 = inlined_call_operand.vmem [shape: f32[36,72], index: 0, kind: input, shape index: {}]   ;;  %s3639_s1 = inlined_call_operand.vmem [shape: bf16[3,72,64], index: 1, kind: input, shape index: {}]   ;;  %s3640_s2 = inlined_call_operand.vmem [shape: bf16[3,80,64], index: 2, kind: input, shape index: {}]   ;;  %s3641_s3 = inlined_call_operand.vmem [shape: bf16[3,80,64], index: 3, kind: input, shape index: {}]   ;;  %s3642_s4 = inlined_call_operand.vmem [shape: bf16[3,80,64], index: 4, kind: input, shape index: {}]   ;;  %s3643_s5 = inlined_call_operand.vmem [shape: bf16[3,96,64], index: 5, kind: input, shape index: {}]   ;;  %s3644_s6 = inlined_call_operand.vmem [shape: bf16[3,96,64], index: 6, kind: input, shape index: {}]   ;;  %s3645_s7 = inlined_call_operand.vmem [shape: bf16[3,96,64], index: 7, kind: input, shape index: {}]   ;;  %s3646_s8 = inlined_call_operand.vmem [shape: f32[7,64], index: 8, kind: input, shape index: {}]   ;;  %s3647_s9 = inlined_call_operand.hbm [shape: f32[8,128], index: 9, kind: output, shape index: {0}]   ;;  %s3648_s10 = inlined_call_operand.hbm [shape: f32[8,128], index: 10, kind: output, shape index: {1}]   ;;  %s3649_s11 = inlined_call_operand.hbm [shape: f32[4,128], index: 11, kind: output, shape index: {2}]   ;;  %s3650_s12 = inlined_call_operand.hbm [shape: f32[4,128], index: 12, kind: output, shape index: {3}]   ;;  %s3651_s13 = inlined_call_operand.hbm [shape: f32[2,128], index: 13, kind: output, shape index: {4}]  }
   0x1   :  { %20 = vsyncpa [#allocation11], 0  ;;  %v2059_v0 = vld [vmem:[%s3639_s1 + $0x44] sm:$0xf]  ;;  %v150_v1 = vld [vmem:[%s3639_s1 + $0x20] sm:$0xf] }
   0x2   :  { %v186_v2 = vunpack.c.l.b16 %v2059_v0  ;;  %v242_v3 = vunpack.c.l.b16 %v150_v1  ;;  %v2107_v4 = vld [vmem:[%s3639_s1 + $0x68] sm:$0xf]  ;;  %vm203_vm0 = vcmask 1043456   ;;  %v2685_v12 = vld [vmem:[%s3639_s1 + $0x3c] sm:$0xff]  ;;  %v2684_v15 = vld [vmem:[%s3639_s1 + $0x34] sm:$0xff] }
   0x3   :  { %v314_v5 = vunpack.c.l.b16 %v2107_v4  ;;  %v2681_v13 = vld [vmem:[%s3639_s1 + $0x18] sm:$0xff]  ;;  %v2689_v14 = vld [vmem:[%s3639_s1 + $0x60] sm:$0xff]  ;;  %v2680_v16 = vld [vmem:[%s3639_s1 + $0x10] sm:$0xff] }
   0x4   :  { %v191_v6 = vpack.c.b16 %v186_v2, %v186_v2  ;;  %v247_v7 = vpack.c.b16 %v242_v3, %v242_v3  ;;  %v2688_v17 = vld [vmem:[%s3639_s1 + $0x58] sm:$0xff] }
   0x5   :  { %v319_v8 = vpack.c.b16 %v314_v5, %v314_v5 }
   0x6   :  { %v205_v9 = vsel %vm203_vm0, %v191_v6, 0  ;;  %v259_v10 = vsel %vm203_vm0, %v247_v7, 0 }
   0x7   :  { %210 = vmatpush.bf16.msra.mxu0 %v205_v9  ;;  %264 = vmatpush.bf16.msra.mxu1 %v259_v10  ;;  %v331_v11 = vsel %vm203_vm0, %v319_v8, 0 }
   0x8   :  { %336 = vmatpush.bf16.msra.mxu2 %v331_v11 }
   0xb   :  { %211 = vmatpush.bf16.msra.mxu0 %v2685_v12  ;;  %265 = vmatpush.bf16.msra.mxu1 %v2681_v13 }
   0xc   :  { %337 = vmatpush.bf16.msra.mxu2 %v2689_v14 }
   0xd   :  { %21 = vsyncpa [#allocation14], 0  ;;  %v2683_v18 = vld [vmem:[%s3639_s1 + $0x2c] sm:$0xff]  ;;  %v2682_v21 = vld [vmem:[%s3639_s1 + $0x24] sm:$0xff]  ;;  %vm196_vm1 = vcmask 588800   ;;  %vm41_vm2 = vcmask 650752  }
   0xe   :  { %v2679_v19 = vld [vmem:[%s3639_s1 + $0x8] sm:$0xff]  ;;  %v2687_v20 = vld [vmem:[%s3639_s1 + $0x50] sm:$0xff]  ;;  %v2678_v22 = vld [vmem:[%s3639_s1] sm:$0xff]  ;;  %v2944_v39 = vmov 0   ;;  %vm92_vm3 = vcmask 781824   ;;  %vm46_vm4 = vcmask 516096  }
   0xf   :  { %212 = vmatpush.bf16.msra.mxu0 %v2684_v15  ;;  %266 = vmatpush.bf16.msra.mxu1 %v2680_v16  ;;  %v2048_v23 = vld [vmem:[%s3638_s0 + $0x1] ss:$2 sm:$0xff]  ;;  %v2049_v24 = vld [vmem:[%s3638_s0 + $0x11] ss:$2 sm:$0xff]  ;;  %v135_v25 = vld [vmem:[%s3638_s0] ss:$2 sm:$0xff] }
  0x10   :  { %338 = vmatpush.bf16.msra.mxu2 %v2688_v17  ;;  %v2046_v26 = vld [vmem:[%s3638_s0 + $0x10] ss:$2 sm:$0xff]  ;;  %v2686_v27 = vld [vmem:[%s3639_s1 + $0x48] sm:$0xff]  ;;  %v157_v30 = vpack.c.bf16 %v2049_v24, %v2048_v23  ;;  %v2050_v33 = vld [vmem:[%s3638_s0 + $0x21] ss:$2 sm:$0x1] }
  0x11   :  { %v2096_v28 = vld [vmem:[%s3638_s0 + $0x2] ss:$2 sm:$0xff]  ;;  %v2097_v29 = vld [vmem:[%s3638_s0 + $0x12] ss:$2 sm:$0xff]  ;;  %v140_v31 = vpack.c.bf16 %v2046_v26, %v135_v25  ;;  %v158_v36 = vpack.c.bf16 %v2050_v33, %v2050_v33  ;;  %42 = vst.msk [vmem:[#allocation2] sm:$0xf] %vm41_vm2, %v2944_v39 }
  0x12   :  { %v285_v32 = vpack.c.bf16 %v2097_v29, %v2096_v28  ;;  %v2047_v34 = vld [vmem:[%s3638_s0 + $0x20] ss:$2 sm:$0x1]  ;;  %v2098_v35 = vld [vmem:[%s3638_s0 + $0x22] ss:$2 sm:$0x1] }
  0x13   :  { %213 = vmatpush.bf16.msra.mxu0 %v2683_v18  ;;  %267 = vmatpush.bf16.msra.mxu1 %v2679_v19  ;;  %v141_v37 = vpack.c.bf16 %v2047_v34, %v2047_v34  ;;  %v286_v38 = vpack.c.bf16 %v2098_v35, %v2098_v35  ;;  %43 = vst.msk [vmem:[#allocation2 + $0x4] sm:$0xf] %vm41_vm2, %v2944_v39  ;;  %vm47_vm5 = vsmask.f32 256  ;;  %vm52_vm6 = vsmask.f32 7938 }
  0x14   :  { %339 = vmatpush.bf16.msra.mxu2 %v2687_v20  ;;  %69 = vst.msk [vmem:[#allocation3 + $0x4] sm:$0xf] %vm41_vm2, %v2944_v39  ;;  %vm3101_vm7 = vmand %vm46_vm4, %vm47_vm5  ;;  %v2694_v51 = vld [vmem:[%s3640_s2 + $0x20] sm:$0xff]  ;;  %vm57_vm9 = vcmask 517121   ;;  %vm58_vm10 = vsmask.f32 1280 }
  0x15   :  { %93 = vst.msk [vmem:[#allocation5] sm:$0xf] %vm92_vm3, %v2944_v39  ;;  %vm53_vm8 = vmand %vm46_vm4, %vm52_vm6  ;;  %vm44_vm12 = vcmask 648704   ;;  %v2693_v55 = vld [vmem:[%s3640_s2 + $0x18] sm:$0xff]  ;;  %v2692_v56 = vld [vmem:[%s3640_s2 + $0x10] sm:$0xff]  ;;  %vm94_vm14 = vcmask 779776  }
  0x16   :  { %114 = vst.msk [vmem:[#allocation6] sm:$0xf] %vm92_vm3, %v2944_v39  ;;  %vm3119_vm11 = vmand %vm57_vm9, %vm58_vm10  ;;  %vm63_vm13 = vsmask.f32 7942  ;;  %v2691_v62 = vld [vmem:[%s3640_s2 + $0x8] sm:$0xff]  ;;  %v2704_v1 = vld [vmem:[%s3640_s2 + $0x70] sm:$0xff] }
  0x17   :  { %214 = vmatpush.bf16.msra.mxu0 %v2682_v21  ;;  %268 = vmatpush.bf16.msra.mxu1 %v2678_v22  ;;  %68 = vst.msk [vmem:[#allocation3] sm:$0xf] %vm41_vm2, %v2944_v39  ;;  %vm3133_vm15 = vmand %vm57_vm9, %vm63_vm13  ;;  %v2690_v2 = vld [vmem:[%s3640_s2] sm:$0xff]  ;;  %v2699_v7 = vld [vmem:[%s3640_s2 + $0x48] sm:$0xff]  ;;  %vm360_vm0 = vcmask 523264   ;;  %vm408_vm9 = vcmask 519169  }
  0x18   :  { %340 = vmatpush.bf16.msra.mxu2 %v2686_v27  ;;  %v49_v41 = vld [vmem:[#allocation2] sm:$0x1]  ;;  %45 = vst.msk [vmem:[#allocation2 + $0x8] sm:$0x3] %vm44_vm12, %v2944_v39  ;;  %507 = vmatpush.bf16.msra.mxu3 %v2699_v7  ;;  %v2703_v10 = vld [vmem:[%s3640_s2 + $0x68] sm:$0xff]  ;;  %v2697_v16 = vld [vmem:[%s3640_s2 + $0x38] sm:$0xff] }
  0x19   :  { %v50_v42 = vsel %vm3101_vm7, 0, %v49_v41  ;;  %70 = vst.msk [vmem:[#allocation3 + $0x8] sm:$0x3] %vm44_vm12, %v2944_v39  ;;  %v2698_v12 = vld [vmem:[%s3640_s2 + $0x40] sm:$0xff]  ;;  %v2701_v20 = vld [vmem:[%s3640_s2 + $0x58] sm:$0xff]  ;;  %v2696_v22 = vld [vmem:[%s3640_s2 + $0x30] sm:$0xff] }
  0x1a   :  { %2076 = vmatmul.msk.bf16.vlgmr.msra.gmra.mxu0 %vm196_vm1, %v157_v30  ;;  %2094 = vmatmul.msk.bf16.vlgmr.msra.gmra.mxu1 %vm196_vm1, %v140_v31  ;;  %v54_v43 = vld [vmem:[#allocation2 + $0x4] sm:$0x1]  ;;  %51 = vst [vmem:[#allocation2] sm:$0x1] %v50_v42  ;;  %v60_v53 = vld [vmem:[#allocation2 + $0x4] sm:$0x2] }
  0x1b   :  { %2124 = vmatmul.msk.bf16.vlgmr.msra.gmra.mxu2 %vm196_vm1, %v285_v32  ;;  %v55_v44 = vsel %vm53_vm8, 0, %v54_v43  ;;  %v74_v45 = vld [vmem:[#allocation3 + $0x4] sm:$0x1]  ;;  %563 = vmatpush.bf16.msrb.mxu0 %v2694_v51  ;;  %v61_v54 = vsel %vm3119_vm11, 0, %v60_v53  ;;  %v77_v57 = vld [vmem:[#allocation3 + $0x4] sm:$0x2] }
  0x1c   :  { %56 = vst [vmem:[#allocation2 + $0x4] sm:$0x1] %v55_v44  ;;  %v75_v46 = vsel %vm53_vm8, 0, %v74_v45  ;;  %v96_v47 = vld [vmem:[#allocation5] sm:$0x1]  ;;  %v78_v59 = vsel %vm3119_vm11, 0, %v77_v57  ;;  %636 = vmatpush.bf16.msrb.mxu1 %v2704_v1  ;;  %508 = vmatpush.bf16.msra.mxu3 %v2698_v12 }
  0x1d   :  { %76 = vst [vmem:[#allocation3 + $0x4] sm:$0x1] %v75_v46  ;;  %v97_v48 = vsel %vm3101_vm7, 0, %v96_v47  ;;  %v116_v49 = vld [vmem:[#allocation6] sm:$0x1]  ;;  %v2702_v13 = vld [vmem:[%s3640_s2 + $0x60] sm:$0xff] }
  0x1e   :  { %98 = vst [vmem:[#allocation5] sm:$0x1] %v97_v48  ;;  %v117_v50 = vsel %vm3101_vm7, 0, %v116_v49  ;;  %v2811_v14 = vld [vmem:[%s3646_s8] ss:$0 sm:$0xff]  ;;  %v2700_v24 = vld [vmem:[%s3640_s2 + $0x50] sm:$0xff] }
  0x1f   :  { %118 = vst [vmem:[#allocation6] sm:$0x1] %v117_v50  ;;  %564 = vmatpush.bf16.msrb.mxu0 %v2693_v55  ;;  %v65_v60 = vld [vmem:[#allocation2 + $0x8] sm:$0x2]  ;;  %vm399_vm11 = vcmask 1040384   ;;  %vm400_vm12 = vcmask 1044484  }
  0x20   :  { %62 = vst [vmem:[#allocation2 + $0x4] sm:$0x2] %v61_v54  ;;  %v66_v61 = vsel %vm3133_vm15, 0, %v65_v60  ;;  %v80_v63 = vld [vmem:[#allocation3 + $0x8] sm:$0x2]  ;;  %637 = vmatpush.bf16.msrb.mxu1 %v2703_v10  ;;  %509 = vmatpush.bf16.msra.mxu3 %v2697_v16  ;;  %v2695_v28 = vld [vmem:[%s3640_s2 + $0x28] sm:$0xff] }
  0x21   :  { %95 = vst.msk [vmem:[#allocation5 + $0x4] sm:$0x3] %vm94_vm14, %v2944_v39  ;;  %v81_v0 = vsel %vm3133_vm15, 0, %v80_v63  ;;  %s2945_s2 = smov 64   ;;  %s1986_s24 = sshll.u32 %s3648_s10, 4  ;;  %s1987_s24 = int_to_ptr.hbm [resolvable:$true] %s1986_s24 }
  0x22   :  { %79 = vst [vmem:[#allocation3 + $0x4] sm:$0x2] %v78_v59  ;;  %s2948_s25 = smov [#allocation13]   ;;  %s1975_s30 = sshll.u32 %s3647_s9, 4  ;;  %s1976_s30 = int_to_ptr.hbm [resolvable:$true] %s1975_s30 }
  0x23   :  { %565 = vmatpush.bf16.msrb.mxu0 %v2692_v56  ;;  %115 = vst.msk [vmem:[#allocation6 + $0x4] sm:$0x3] %vm94_vm14, %v2944_v39  ;;  %vm413_vm14 = vcmask 517120   ;;  %s2006_s26 = sshll.u32 %s2948_s25, 4  ;;  %s2949_s10 = smov [#allocation8]   ;;  %s2007_s26 = int_to_ptr.vmem [resolvable:$true] %s2006_s26 }
  0x24   :  { %67 = vst [vmem:[#allocation2 + $0x8] sm:$0x2] %v66_v61  ;;  %638 = vmatpush.bf16.msrb.mxu1 %v2702_v13  ;;  %510 = vmatpush.bf16.msra.mxu3 %v2696_v22  ;;  %s1973_s14 = sshll.u32 %s2949_s10, 4  ;;  %s2950_s15 = smov [#allocation12]   ;;  %s1974_s14 = int_to_ptr.vmem [resolvable:$true] %s1973_s14 }
  0x25   :  { %82 = vst [vmem:[#allocation3 + $0x8] sm:$0x2] %v81_v0  ;;  %s1995_s16 = sshll.u32 %s2950_s15, 4  ;;  %s2019_s20 = sshll.u32 %s3651_s13, 4  ;;  %s1996_s16 = int_to_ptr.vmem [resolvable:$true] %s1995_s16  ;;  %s2020_s20 = int_to_ptr.hbm [resolvable:$true] %s2019_s20 }
  0x27   :  { %566 = vmatpush.bf16.msrb.mxu0 %v2691_v62  ;;  %v410_v48 = vld [vmem:[#allocation2 + $0x4] sm:$0xe] }
  0x28   :  { %v111_v5 = vld [vmem:[#allocation5 + $0x4] sm:$0x2]  ;;  %639 = vmatpush.bf16.msrb.mxu1 %v2701_v20  ;;  %511 = vmatpush.bf16.msra.mxu3 %v2695_v28 }
  0x29   :  { %v112_v6 = vsel %vm3133_vm15, 0, %v111_v5 }
  0x2a   :  { %2077 = vmatmul.msk.bf16.gmra.mxu0 %vm196_vm1, %v158_v36  ;;  %2095 = vmatmul.msk.bf16.gmra.mxu1 %vm196_vm1, %v141_v37  ;;  %113 = vst [vmem:[#allocation5 + $0x4] sm:$0x2] %v112_v6  ;;  %v125_v8 = vld [vmem:[#allocation6 + $0x4] sm:$0x2]  ;;  %v375_v37 = vld [vmem:[#allocation2] sm:$0xf] }
  0x2b   :  { %2125 = vmatmul.msk.bf16.gmra.mxu2 %vm196_vm1, %v286_v38  ;;  %567 = vmatpush.bf16.msrb.mxu0 %v2690_v2  ;;  %v126_v9 = vsel %vm3133_vm15, 0, %v125_v8  ;;  %vm3652_vm1 = vcmask 519168   ;;  %v378_v38 = vld [vmem:[#allocation2 + $0x4] sm:$0x1]  ;;  %vm3212_vm15 = vmand %vm413_vm14, %vm58_vm10  ;;  %v415_v63 = vld [vmem:[#allocation2 + $0x8] sm:$0x3] }
  0x2c   :  { %127 = vst [vmem:[#allocation6 + $0x4] sm:$0x2] %v126_v9  ;;  %640 = vmatpush.bf16.msrb.mxu1 %v2700_v24  ;;  %vm3189_vm8 = vmand %vm3652_vm1, %vm52_vm6  ;;  %vm593_vm10 = vcmask 1046528   ;;  %vm3653_vm1 = vcmask 1040896  }
  0x2d   :  { %vm3199_vm6 = vmand %vm408_vm9, %vm63_vm13  ;;  %vm497_vm9 = vcmask 654336  }
  0x2e   :  { %vm3206_vm13 = vmor %vm399_vm11, %vm400_vm12  ;;  %vm451_vm11 = vsmask.f32 7424  ;;  %vm391_vm12 = vcmask 1048065  }
  0x97   :  { %v216_v3 = vpop.f32.mrf.mxu0  ;;  %v270_v4 = vpop.f32.mrf.mxu1 }
  0x98   :  { %v271_v11 = vadd.f32 %v270_v4, %v216_v3 }
  0x9e   :  { %v342_v15 = vpop.f32.mrf.mxu2 }
  0x9f   :  { %v351_v17 = vadd.f32 %v342_v15, %v271_v11  ;;  %v218_v18 = vpop.f32.mrf.mxu0  ;;  %v272_v19 = vpop.f32.mrf.mxu1 }
  0xa0   :  { %v273_v26 = vadd.f32 %v272_v19, %v218_v18 }
  0xa1   :  { %v356_v21 = vadd.f32 %v2811_v14, %v351_v17 }
  0xa3   :  { %v359_v23 = vmax.f32 %v356_v21, 0.0 }
  0xa5   :  { %v362_v25 = vpack.c.bf16 %v359_v23, %v359_v23  ;;  %361 = vst.msk [vmem:[#allocation8] sm:$0xff] %vm360_vm0, %v359_v23 }
  0xa6   :  { %v344_v27 = vpop.f32.mrf.mxu2 }
  0xa7   :  { %v364_v29 = vshrl.u32 %v362_v25, 16  ;;  %v352_v30 = vadd.f32 %v344_v27, %v273_v26  ;;  %v221_v31 = vpop.f32.mrf.mxu0  ;;  %v275_v32 = vpop.f32.mrf.mxu1  ;;  %v367_v34 = vshll.u32 %v362_v25, 16  ;;  %v71_v26 = vld [vmem:[#allocation3] sm:$0x1] }
  0xa8   :  { %v276_v42 = vadd.f32 %v275_v32, %v221_v31  ;;  %v72_v27 = vsel %vm3101_vm7, 0, %v71_v26  ;;  %v2708_v31 = vld [vmem:[%s3641_s3 + $0x18] sm:$0xff]  ;;  %v2707_v32 = vld [vmem:[%s3641_s3 + $0x10] sm:$0xff] }
  0xa9   :  { %v366_v33 = vrot.slane %v364_v29, 7  ;;  %v357_v35 = vadd.f32 %v2811_v14, %v352_v30  ;;  %73 = vst [vmem:[#allocation3] sm:$0x1] %v72_v27  ;;  %v2709_v29 = vld [vmem:[%s3641_s3 + $0x20] sm:$0xff] }
  0xaa   :  { %850 = vmatpush.bf16.msrb.mxu3 %v2709_v29 }
  0xab   :  { %v369_v39 = vor.u32 %v367_v34, %v366_v33  ;;  %v370_v41 = vrot.slane %v366_v33, 4  ;;  %v381_v43 = vmax.f32 %v357_v35, 0.0  ;;  %v2706_v35 = vld [vmem:[%s3641_s3 + $0x8] sm:$0xff] }
  0xad   :  { %v376_v44 = vsel %vm3189_vm8, %v369_v39, %v375_v37  ;;  %v379_v45 = vsel %vm3101_vm7, %v370_v41, %v378_v38  ;;  %385 = vrot.lane.b32.xlu2 %v381_v43, %s2945_s2  ;;  %v395_v46 = vpack.c.bf16 %v381_v43, %v381_v43  ;;  %v2719_v37 = vld [vmem:[%s3641_s3 + $0x70] sm:$0xff]  ;;  %v2705_v38 = vld [vmem:[%s3641_s3] sm:$0xff] }
  0xae   :  { %377 = vst [vmem:[#allocation2] sm:$0xf] %v376_v44  ;;  %v347_v49 = vpop.f32.mrf.mxu2  ;;  %851 = vmatpush.bf16.msrb.mxu3 %v2708_v31  ;;  %922 = vmatpush.bf16.msra.mxu0 %v2719_v37  ;;  %v2812_v44 = vld [vmem:[%s3646_s8 + $0x1] ss:$0 sm:$0xff]  ;;  %v704_v31 = vld [vmem:[#allocation3 + $0x8] sm:$0x3] }
  0xaf   :  { %380 = vst [vmem:[#allocation2 + $0x4] sm:$0x1] %v379_v45  ;;  %v402_v50 = vrot.slane %v395_v46, 7  ;;  %v353_v51 = vadd.f32 %v347_v49, %v276_v42  ;;  %v223_v52 = vpop.f32.mrf.mxu0  ;;  %v277_v53 = vpop.f32.mrf.mxu1  ;;  %v2714_v42 = vld [vmem:[%s3641_s3 + $0x48] sm:$0xff]  ;;  %v2713_v49 = vld [vmem:[%s3641_s3 + $0x40] sm:$0xff] }
  0xb0   :  { %794 = vmatpush.bf16.msrb.mxu2 %v2714_v42  ;;  %v2718_v46 = vld [vmem:[%s3641_s3 + $0x68] sm:$0xff]  ;;  %v2717_v52 = vld [vmem:[%s3641_s3 + $0x60] sm:$0xff] }
  0xb1   :  { %v411_v54 = vsel %vm3199_vm6, %v402_v50, %v410_v48  ;;  %v358_v55 = vadd.f32 %v2811_v14, %v353_v51  ;;  %v403_v60 = vrot.slane %v402_v50, 4  ;;  %v2712_v51 = vld [vmem:[%s3641_s3 + $0x38] sm:$0xff] }
  0xb2   :  { %412 = vst [vmem:[#allocation2 + $0x4] sm:$0xe] %v411_v54  ;;  %852 = vmatpush.bf16.msrb.mxu3 %v2707_v32  ;;  %923 = vmatpush.bf16.msra.mxu0 %v2718_v46 }
  0xb3   :  { %v382_v56 = vmax.f32 %v358_v55, 0.0  ;;  %v2716_v55 = vld [vmem:[%s3641_s3 + $0x58] sm:$0xff] }
  0xb4   :  { %795 = vmatpush.bf16.msrb.mxu2 %v2713_v49 }
  0xb5   :  { %v396_v57 = vpack.c.bf16 %v382_v56, %v382_v56  ;;  %387 = vrot.lane.b32.xlu2 %v382_v56, %s2945_s2  ;;  %v2798_v7 = vld [vmem:[#allocation2] sm:$0xe] }
  0xb6   :  { %v349_v59 = vpop.f32.mrf.mxu2  ;;  %853 = vmatpush.bf16.msrb.mxu3 %v2706_v35  ;;  %924 = vmatpush.bf16.msra.mxu0 %v2717_v52 }
  0xb7   :  { %v404_v61 = vrot.slane %v396_v57, 7 }
  0xb8   :  { %796 = vmatpush.bf16.msrb.mxu2 %v2712_v51 }
  0xb9   :  { %v405_v0 = vsel %vm3206_vm13, %v403_v60, %v404_v61  ;;  %v2790_v1 = vld [vmem:[#allocation2] sm:$0xff]   ;;  %v2711_v60 = vld [vmem:[%s3641_s3 + $0x30] sm:$0xff] }
  0xba   :  { %v416_v2 = vsel %vm3212_vm15, %v405_v0, %v415_v63  ;;  %2178 = vmatmul.msk.bf16.vlgmr.msrb.gmra.mxu0 %vm497_vm9, %v2790_v1  ;;  %v2797_v3 = vld [vmem:[#allocation2] sm:$0xf0]  ;;  %v455_v4 = vshll.u32 %v2790_v1, 16  ;;  %v453_v13 = vshrl.u32 %v2790_v1, 16  ;;  %854 = vmatpush.bf16.msrb.mxu3 %v2705_v38  ;;  %v2715_v0 = vld [vmem:[%s3641_s3 + $0x50] sm:$0xff] }
  0xbb   :  { %417 = vst [vmem:[#allocation2 + $0x8] sm:$0x3] %v416_v2  ;;  %v2799_v9 = vor.u32 %v2798_v7, %v2797_v3  ;;  %925 = vmatpush.bf16.msra.mxu0 %v2716_v55 }
  0xbc   :  { %v457_v11 = vrot.slane %v455_v4, 1  ;;  %v671_v4 = vld [vmem:[#allocation3] sm:$0xf]  ;;  %797 = vmatpush.bf16.msrb.mxu2 %v2711_v60  ;;  %v2946_v60 = vmov 0.0  }
  0xbd   :  { %v594_v14 = vrot.slane %v2799_v9, 1  ;;  %86 = vst.msk [vmem:[#allocation4 + $0x10] sm:$0xf] %vm41_vm2, %v2946_v60  ;;  %vm987_vm2 = vcmask 523266  }
  0xbe   :  { %v458_v19 = vor.u32 %v457_v11, %v453_v13  ;;  %130 = vst.msk [vmem:[#allocation7 + $0x8] sm:$0xf] %vm92_vm3, %v2946_v60  ;;  %vm983_vm3 = vcmask 1048066  }
  0xbf   :  { %926 = vmatpush.bf16.msra.mxu0 %v2715_v0  ;;  %v2734_v0 = vld [vmem:[%s3642_s4 + $0x70] sm:$0xff] }
  0xc2   :  { %v420_v5 = vld [vmem:[#allocation2 + $0x8] sm:$0x1] }
  0xc3   :  { %v431_v6 = vld [vmem:[#allocation2 + $0x8] sm:$0x3]  ;;  %v523_v10 = vunpack.c.l.b16 %v420_v5  ;;  %v674_v5 = vld [vmem:[#allocation3 + $0x4] sm:$0x1] }
  0xc4   :  { %v448_v8 = vunpack.c.l.b16 %v431_v6  ;;  %v2710_v6 = vld [vmem:[%s3641_s3 + $0x28] sm:$0xff] }
  0xc5   :  { %v524_v17 = vpack.c.b16 %v523_v10, %v523_v10  ;;  %798 = vmatpush.bf16.msrb.mxu2 %v2710_v6  ;;  %v2732_v6 = vld [vmem:[%s3642_s4 + $0x60] sm:$0xff] }
  0xc6   :  { %v450_v12 = vpack.c.b16 %v448_v8, %v448_v8 }
  0xc8   :  { %v595_v15 = vrot.slane %v450_v12, 1  ;;  %v460_v16 = vshll.u32 %v450_v12, 16  ;;  %v464_v22 = vshrl.u32 %v450_v12, 16 }
  0xca   :  { %v596_v18 = vsel %vm593_vm10, %v594_v14, %v595_v15  ;;  %v462_v20 = vrot.slane %v460_v16, 1  ;;  %2179 = vmatmul.msk.bf16.gmra.mxu0 %vm497_vm9, %v524_v17 }
  0xcb   :  { %2210 = vmatmul.msk.bf16.vlgmr.msrb.gmra.mxu1 %vm497_vm9, %v596_v18 }
  0xcc   :  { %v463_v21 = vsel %vm451_vm11, %v458_v19, %v462_v20  ;;  %v466_v23 = vor.u32 %v464_v22, %v462_v20 }
  0xcd   :  { %2156 = vmatmul.msk.bf16.vlgmr.msra.gmra.mxu3 %vm497_vm9, %v463_v21  ;;  %v701_v21 = vld [vmem:[#allocation3 + $0x4] sm:$0xe] }
  0xce   :  { %1167 = vmatpush.bf16.msra.mxu3 %v2734_v0 }
  0xdb   :  { %2211 = vmatmul.msk.bf16.gmra.mxu1 %vm497_vm9, %v595_v15 }
  0xdd   :  { %2157 = vmatmul.msk.bf16.gmra.mxu3 %vm497_vm9, %v466_v23 }
 0x107   :  { %v386_v24 = vpop.permute.xlu2 %385 }
 0x108   :  { %392 = vst.msk [vmem:[#allocation8 - $0x1] sm:$0xfe] %vm391_vm12, %v386_v24 }
 0x10f   :  { %v388_v25 = vpop.permute.xlu2 %387 }
 0x110   :  { %394 = vst.msk [vmem:[#allocation8 + $0x7] sm:$0x1] %vm3653_vm1, %v388_v25 }
 0x111   :  { %1978 = dma.vmem_to_hbm [thread:$0]  %s1974_s14, 128, %s1976_s30, [#allocation9]  }
 0x137   :  { %v569_v28 = vpop.f32.mrf.mxu0 }
 0x13f   :  { %v571_v30 = vpop.f32.mrf.mxu0 }
 0x147   :  { %v574_v33 = vpop.f32.mrf.mxu0 }
 0x148   :  { %v642_v34 = vpop.f32.mrf.mxu1 }
 0x14f   :  { %v576_v41 = vpop.f32.mrf.mxu0 }
 0x150   :  { %v513_v39 = vpop.f32.mrf.mxu3  ;;  %v644_v45 = vpop.f32.mrf.mxu1 }
 0x151   :  { %v570_v43 = vadd.f32 %v569_v28, %v513_v39 }
 0x153   :  { %v651_v48 = vadd.f32 %v642_v34, %v570_v43 }
 0x155   :  { %v656_v50 = vadd.f32 %v2812_v44, %v651_v48 }
 0x157   :  { %v659_v53 = vmax.f32 %v656_v50, 0.0 }
 0x158   :  { %v515_v54 = vpop.f32.mrf.mxu3  ;;  %v647_v59 = vpop.f32.mrf.mxu1 }
 0x159   :  { %v660_v56 = vpack.c.bf16 %v659_v53, %v659_v53  ;;  %v572_v57 = vadd.f32 %v571_v30, %v515_v54 }
 0x15b   :  { %v662_v61 = vshrl.u32 %v660_v56, 16  ;;  %v652_v63 = vadd.f32 %v644_v45, %v572_v57  ;;  %v665_v2 = vshll.u32 %v660_v56, 16 }
 0x15d   :  { %v664_v1 = vrot.slane %v662_v61, 7  ;;  %v657_v3 = vadd.f32 %v2812_v44, %v652_v63  ;;  %v2728_v61 = vld [vmem:[%s3642_s4 + $0x40] sm:$0xff] }
 0x15f   :  { %v667_v7 = vor.u32 %v665_v2, %v664_v1  ;;  %v668_v8 = vrot.slane %v664_v1, 4  ;;  %v677_v9 = vmax.f32 %v657_v3, 0.0  ;;  %v2727_v1 = vld [vmem:[%s3642_s4 + $0x38] sm:$0xff]  ;;  %v2733_v2 = vld [vmem:[%s3642_s4 + $0x68] sm:$0xff] }
 0x160   :  { %v518_v10 = vpop.f32.mrf.mxu3  ;;  %v649_v15 = vpop.f32.mrf.mxu1  ;;  %1168 = vmatpush.bf16.msra.mxu3 %v2733_v2 }
 0x161   :  { %v672_v11 = vsel %vm3189_vm8, %v667_v7, %v671_v4  ;;  %v675_v12 = vsel %vm3101_vm7, %v668_v8, %v674_v5  ;;  %v679_v13 = vpack.c.bf16 %v677_v9, %v677_v9  ;;  %v575_v14 = vadd.f32 %v574_v33, %v518_v10  ;;  %v2726_v5 = vld [vmem:[%s3642_s4 + $0x30] sm:$0xff]  ;;  %v945_v7 = vld [vmem:[#allocation2] sm:$0xf]  ;;  %v946_v8 = vld [vmem:[#allocation2 + $0x4] sm:$0x1] }
 0x162   :  { %673 = vst [vmem:[#allocation3] sm:$0xf] %v672_v11  ;;  %vm681_vm7 = vsmask.f32 4368  ;;  %v2731_v9 = vld [vmem:[%s3642_s4 + $0x58] sm:$0xff]  ;;  %v2725_v10 = vld [vmem:[%s3642_s4 + $0x28] sm:$0xff] }
 0x163   :  { %676 = vst [vmem:[#allocation3 + $0x4] sm:$0x1] %v675_v12  ;;  %v684_v16 = vshrl.u32 %v679_v13, 16  ;;  %v653_v17 = vadd.f32 %v647_v59, %v575_v14  ;;  %v687_v19 = vshll.u32 %v679_v13, 16  ;;  %vm3286_vm8 = vmor %vm47_vm5, %vm681_vm7  ;;  %vm83_vm5 = vcmask 654848   ;;  %v2729_v59 = vld [vmem:[%s3642_s4 + $0x48] sm:$0xff] }
 0x164   :  { %84 = vst.msk [vmem:[#allocation4] sm:$0xff] %vm83_vm5, %v2946_v60  ;;  %1057 = vmatpush.bf16.msra.mxu2 %v2729_v59  ;;  %1169 = vmatpush.bf16.msra.mxu3 %v2732_v6  ;;  %v2724_v11 = vld [vmem:[%s3642_s4 + $0x20] sm:$0xff]  ;;  %v947_v13 = vunpack.c.l.bf16 %v945_v7  ;;  %v948_v14 = vunpack.c.l.bf16 %v946_v8  ;;  %v2730_v15 = vld [vmem:[%s3642_s4 + $0x50] sm:$0xff]  ;;  %vm100_vm7 = vsmask.f32 7946 }
 0x165   :  { %v686_v18 = vrot.slane %v684_v16, 7  ;;  %v658_v20 = vadd.f32 %v2812_v44, %v653_v17  ;;  %85 = vst.msk [vmem:[#allocation4 + $0x8] sm:$0xff] %vm83_vm5, %v2946_v60  ;;  %v108_v6 = vld [vmem:[#allocation5] sm:$0x8]  ;;  %v2757_v8 = vld [vmem:[%s3644_s6 + $0x20] sm:$0xff] }
 0x166   :  { %88 = vst.msk [vmem:[#allocation4] sm:$0x1] %vm46_vm4, %v2946_v60 }
 0x167   :  { %v689_v22 = vor.u32 %v687_v19, %v686_v18  ;;  %v678_v23 = vmax.f32 %v658_v20, 0.0  ;;  %v690_v29 = vrot.slane %v686_v18, 4  ;;  %89 = vst.msk [vmem:[#allocation4 + $0x9] sm:$0x1] %vm46_vm4, %v2946_v60  ;;  %v2813_v19 = vld [vmem:[%s3646_s8 + $0x2] ss:$0 sm:$0xff] }
 0x168   :  { %v520_v24 = vpop.f32.mrf.mxu3  ;;  %90 = vst.msk [vmem:[#allocation4 + $0xa] sm:$0x1] %vm46_vm4, %v2946_v60  ;;  %1058 = vmatpush.bf16.msra.mxu2 %v2728_v61  ;;  %1170 = vmatpush.bf16.msra.mxu3 %v2731_v9  ;;  %v952_v20 = vrot.slane %v947_v13, 1  ;;  %v102_v9 = vld [vmem:[#allocation5] sm:$0x4]  ;;  %v2739_v13 = vld [vmem:[%s3643_s5 + $0x20] sm:$0xff] }
 0x169   :  { %v702_v36 = vsel %vm3199_vm6, %v689_v22, %v701_v21  ;;  %v680_v40 = vpack.c.bf16 %v678_v23, %v678_v23  ;;  %v2801_v39 = vld [vmem:[#allocation3] sm:$0xe]  ;;  %v953_v21 = vrot.slane %v948_v14, 1  ;;  %v961_v23 = vld [vmem:[#allocation2 + $0x8] sm:$0x3]  ;;  %vm105_vm6 = vcmask 519171  }
 0x16a   :  { %703 = vst [vmem:[#allocation3 + $0x4] sm:$0xe] %v702_v36  ;;  %v960_v36 = vld [vmem:[#allocation2 + $0x4] sm:$0xe] }
 0x16b   :  { %v692_v25 = vshrl.u32 %v680_v40, 16  ;;  %v695_v27 = vshll.u32 %v680_v40, 16  ;;  %v2723_v40 = vld [vmem:[%s3642_s4 + $0x18] sm:$0xff] }
 0x16c   :  { %1059 = vmatpush.bf16.msra.mxu2 %v2727_v1  ;;  %1171 = vmatpush.bf16.msra.mxu3 %v2730_v15  ;;  %v2746_v15 = vld [vmem:[%s3643_s5 + $0x58] sm:$0xff] }
 0x16d   :  { %v694_v26 = vrot.slane %v692_v25, 7  ;;  %v954_v25 = vsel %vm593_vm10, %v952_v20, %v953_v21  ;;  %1313 = vmatpush.bf16.msra.mxu1 %v2746_v15  ;;  %v2744_v20 = vld [vmem:[%s3643_s5 + $0x48] sm:$0xff]  ;;  %v2737_v21 = vld [vmem:[%s3643_s5 + $0x10] sm:$0xff] }
 0x16f   :  { %v697_v30 = vor.u32 %v695_v27, %v694_v26  ;;  %v963_v27 = vunpack.c.l.bf16 %v961_v23  ;;  %v2749_v23 = vld [vmem:[%s3643_s5 + $0x70] sm:$0xff] }
 0x170   :  { %1060 = vmatpush.bf16.msra.mxu2 %v2726_v5  ;;  %v2764_v5 = vld [vmem:[%s3644_s6 + $0x58] sm:$0xff] }
 0x171   :  { %v698_v32 = vsel %vm3286_vm8, %v690_v29, %v697_v30  ;;  %v2794_v33 = vld [vmem:[#allocation3] sm:$0xff]   ;;  %1571 = vmatpush.bf16.msrb.mxu0 %v2764_v5 }
 0x172   :  { %v705_v47 = vsel %vm3212_vm15, %v698_v32, %v704_v31  ;;  %2264 = vmatmul.msk.bf16.vlgmr.msrb.gmra.mxu3 %vm497_vm9, %v2794_v33  ;;  %v2800_v34 = vld [vmem:[#allocation3] sm:$0xf0]  ;;  %v743_v35 = vshll.u32 %v2794_v33, 16  ;;  %v741_v46 = vshrl.u32 %v2794_v33, 16  ;;  %v962_v33 = vunpack.c.l.bf16 %v960_v36  ;;  %v2743_v36 = vld [vmem:[%s3643_s5 + $0x40] sm:$0xff] }
 0x173   :  { %706 = vst [vmem:[#allocation3 + $0x8] sm:$0x3] %v705_v47  ;;  %v2802_v42 = vor.u32 %v2801_v39, %v2800_v34  ;;  %v2722_v30 = vld [vmem:[%s3642_s4 + $0x10] sm:$0xff] }
 0x174   :  { %v745_v44 = vrot.slane %v743_v35, 1  ;;  %1061 = vmatpush.bf16.msra.mxu2 %v2725_v10  ;;  %v967_v35 = vrot.slane %v963_v27, 1  ;;  %v966_v39 = vrot.slane %v962_v33, 1 }
 0x175   :  { %v880_v48 = vrot.slane %v2802_v42, 1 }
 0x176   :  { %v746_v52 = vor.u32 %v745_v44, %v741_v46  ;;  %v968_v42 = vsel %vm593_vm10, %v966_v39, %v967_v35  ;;  %v2720_v44 = vld [vmem:[%s3642_s4] sm:$0xff] }
 0x17a   :  { %v709_v37 = vld [vmem:[#allocation3 + $0x8] sm:$0x1] }
 0x17b   :  { %v720_v38 = vld [vmem:[#allocation3 + $0x8] sm:$0x3]  ;;  %v810_v43 = vunpack.c.l.b16 %v709_v37 }
 0x17c   :  { %v737_v41 = vunpack.c.l.b16 %v720_v38  ;;  %v2721_v38 = vld [vmem:[%s3642_s4 + $0x8] sm:$0xff] }
 0x17d   :  { %v811_v51 = vpack.c.b16 %v810_v43, %v810_v43 }
 0x17e   :  { %v739_v45 = vpack.c.b16 %v737_v41, %v737_v41 }
 0x180   :  { %v881_v49 = vrot.slane %v739_v45, 1  ;;  %v748_v50 = vshll.u32 %v739_v45, 16  ;;  %v752_v56 = vshrl.u32 %v739_v45, 16 }
 0x182   :  { %v882_v53 = vsel %vm593_vm10, %v880_v48, %v881_v49  ;;  %v750_v54 = vrot.slane %v748_v50, 1  ;;  %2265 = vmatmul.msk.bf16.gmra.mxu3 %vm497_vm9, %v811_v51 }
 0x183   :  { %2296 = vmatmul.msk.bf16.vlgmr.msra.gmra.mxu0 %vm497_vm9, %v882_v53 }
 0x184   :  { %v751_v55 = vsel %vm451_vm11, %v746_v52, %v750_v54  ;;  %v754_v57 = vor.u32 %v752_v56, %v750_v54  ;;  %vm106_vm11 = vsmask.f32 3328 }
 0x185   :  { %2242 = vmatmul.msk.bf16.vlgmr.msrb.gmra.mxu2 %vm497_vm9, %v751_v55  ;;  %vm3374_vm12 = vmand %vm105_vm6, %vm106_vm11  ;;  %vm1196_vm11 = vcmask 518144  }
 0x186   :  { %1104 = vmatpush.bf16.msrb.mxu2 %v2724_v11  ;;  %v109_v7 = vsel %vm3374_vm12, 0, %v108_v6  ;;  %v2740_v11 = vld [vmem:[%s3643_s5 + $0x28] sm:$0xff] }
 0x187   :  { %110 = vst [vmem:[#allocation5] sm:$0x8] %v109_v7 }
 0x18a   :  { %1105 = vmatpush.bf16.msrb.mxu2 %v2723_v40  ;;  %v2748_v40 = vld [vmem:[%s3643_s5 + $0x68] sm:$0xff] }
 0x18e   :  { %1106 = vmatpush.bf16.msrb.mxu2 %v2722_v30  ;;  %v2747_v30 = vld [vmem:[%s3643_s5 + $0x60] sm:$0xff] }
 0x192   :  { %1107 = vmatpush.bf16.msrb.mxu2 %v2721_v38 }
 0x193   :  { %2297 = vmatmul.msk.bf16.gmra.mxu0 %vm497_vm9, %v881_v49 }
 0x195   :  { %2243 = vmatmul.msk.bf16.gmra.mxu2 %vm497_vm9, %v754_v57 }
 0x196   :  { %1108 = vmatpush.bf16.msrb.mxu2 %v2720_v44 }
 0x1f5   :  { %v856_v63 = vpop.f32.mrf.mxu3 }
 0x1fd   :  { %v858_v3 = vpop.f32.mrf.mxu3 }
 0x200   :  { %v928_v4 = vpop.f32.mrf.mxu0 }
 0x205   :  { %v861_v12 = vpop.f32.mrf.mxu3 }
 0x208   :  { %v800_v16 = vpop.f32.mrf.mxu2  ;;  %v930_v17 = vpop.f32.mrf.mxu0 }
 0x209   :  { %v857_v18 = vadd.f32 %v856_v63, %v800_v16  ;;  %v2751_v16 = vld [vmem:[%s3643_s5 + $0x80] sm:$0xff] }
 0x20b   :  { %v937_v22 = vadd.f32 %v928_v4, %v857_v18  ;;  %v2745_v18 = vld [vmem:[%s3643_s5 + $0x50] sm:$0xff] }
 0x20c   :  { %1314 = vmatpush.bf16.msra.mxu1 %v2745_v18 }
 0x20d   :  { %v942_v24 = vadd.f32 %v2813_v19, %v937_v22  ;;  %v863_v26 = vpop.f32.mrf.mxu3 }
 0x20e   :  { %v2742_v26 = vld [vmem:[%s3643_s5 + $0x38] sm:$0xff] }
 0x20f   :  { %v956_v29 = vadd.f32 %v954_v25, %v942_v24  ;;  %v2736_v24 = vld [vmem:[%s3643_s5 + $0x8] sm:$0xff]  ;;  %v2735_v25 = vld [vmem:[%s3643_s5] sm:$0xff] }
 0x210   :  { %v802_v31 = vpop.f32.mrf.mxu2  ;;  %v933_v32 = vpop.f32.mrf.mxu0  ;;  %1315 = vmatpush.bf16.msra.mxu1 %v2744_v20  ;;  %v119_v20 = vld [vmem:[#allocation6] sm:$0x4] }
 0x211   :  { %v957_v47 = vmax.f32 %v956_v29, 0.0  ;;  %v859_v34 = vadd.f32 %v858_v3, %v802_v31 }
 0x213   :  { %958 = vst.msk [vmem:[#allocation10] sm:$0xff] %vm360_vm0, %v957_v47  ;;  %v938_v37 = vadd.f32 %v930_v17, %v859_v34  ;;  %v2738_v17 = vld [vmem:[%s3643_s5 + $0x18] sm:$0xff] }
 0x214   :  { %959 = vst.msk [vmem:[#allocation4 + $0x1] sm:$0xff] %vm360_vm0, %v957_v47  ;;  %vm985_vm0 = vcmask 1041920   ;;  %1316 = vmatpush.bf16.msra.mxu1 %v2743_v36  ;;  %v2741_v47 = vld [vmem:[%s3643_s5 + $0x30] sm:$0xff]  ;;  %v2770_v36 = vld [vmem:[%s3644_s6 + $0x88] sm:$0xff] }
 0x215   :  { %v943_v41 = vadd.f32 %v2813_v19, %v938_v37 }
 0x217   :  { %v971_v43 = vadd.f32 %v968_v42, %v943_v41 }
 0x218   :  { %v805_v45 = vpop.f32.mrf.mxu2  ;;  %v935_v46 = vpop.f32.mrf.mxu0  ;;  %1317 = vmatpush.bf16.msra.mxu1 %v2742_v26  ;;  %v2763_v26 = vld [vmem:[%s3644_s6 + $0x50] sm:$0xff] }
 0x219   :  { %v862_v48 = vadd.f32 %v861_v12, %v805_v45  ;;  %v973_v49 = vmax.f32 %v971_v43, 0.0  ;;  %v2752_v12 = vld [vmem:[%s3643_s5 + $0x88] sm:$0xff]  ;;  %v1225_v43 = vld [vmem:[#allocation5] sm:$0x8]  ;;  %1572 = vmatpush.bf16.msrb.mxu0 %v2763_v26  ;;  %v2775_v26 = vld [vmem:[%s3645_s7 + $0x20] sm:$0xff] }
 0x21a   :  { %1440 = vmatpush.bf16.msrb.mxu3 %v2752_v12 }
 0x21b   :  { %v939_v50 = vadd.f32 %v933_v32, %v862_v48  ;;  %977 = vrot.lane.b32.xlu0 %v973_v49, %s2945_s2  ;;  %988 = vst.msk [vmem:[#allocation4 + $0x9] sm:$0xfc] %vm987_vm2, %v973_v49  ;;  %v2814_v32 = vld [vmem:[%s3646_s8 + $0x3] ss:$0 sm:$0xff]  ;;  %vm1223_vm2 = vsmask.f32 7950 }
 0x21c   :  { %1318 = vmatpush.bf16.msra.mxu1 %v2741_v47  ;;  %v2766_v47 = vld [vmem:[%s3644_s6 + $0x68] sm:$0xff] }
 0x21d   :  { %v944_v51 = vadd.f32 %v2813_v19, %v939_v50  ;;  %v2750_v19 = vld [vmem:[%s3643_s5 + $0x78] sm:$0xff] }
 0x21e   :  { %1441 = vmatpush.bf16.msrb.mxu3 %v2751_v16 }
 0x21f   :  { %v972_v52 = vadd.f32 %v967_v35, %v944_v51 }
 0x220   :  { %v807_v53 = vpop.f32.mrf.mxu2 }
 0x221   :  { %v974_v54 = vmax.f32 %v972_v52, 0.0 }
 0x222   :  { %v1006_v55 = vld [vmem:[#allocation4 + $0x1] ss:$2 sm:$0xff]  ;;  %v1116_v56 = vld [vmem:[#allocation4 + $0x2] ss:$2 sm:$0xff]  ;;  %1442 = vmatpush.bf16.msrb.mxu3 %v2750_v19 }
 0x223   :  { %990 = vst.msk [vmem:[#allocation4 + $0x11] sm:$0x3] %vm413_vm14, %v974_v54  ;;  %979 = vrot.lane.b32.xlu0 %v974_v54, %s2945_s2  ;;  %v991_v0 = vld [vmem:[#allocation4] ss:$2 sm:$0xff] }
 0x224   :  { %v993_v1 = vld [vmem:[#allocation4 + $0x10] ss:$2 sm:$0x1] }
 0x225   :  { %v994_v2 = vpack.c.bf16 %v993_v1, %v991_v0 }
 0x226   :  { %1443 = vmatpush.bf16.msrb.mxu3 %v2749_v23 }
 0x22a   :  { %v1008_v57 = vld [vmem:[#allocation4 + $0x11] ss:$2 sm:$0x1]  ;;  %v1118_v59 = vld [vmem:[#allocation4 + $0x12] ss:$2 sm:$0x1]  ;;  %1444 = vmatpush.bf16.msrb.mxu3 %v2748_v40 }
 0x22b   :  { %v1009_v61 = vpack.c.bf16 %v1008_v57, %v1006_v55  ;;  %v1119_v63 = vpack.c.bf16 %v1118_v59, %v1116_v56  ;;  %v2769_v40 = vld [vmem:[%s3644_s6 + $0x80] sm:$0xff] }
 0x22d   :  { %2328 = vmatmul.msk.bf16.vlgmr.msra.gmra.mxu2 %vm497_vm9, %v1009_v61  ;;  %2380 = vmatmul.msk.bf16.vlgmr.msra.gmra.mxu3 %vm497_vm9, %v1119_v63  ;;  %v1228_v61 = vld [vmem:[#allocation5 + $0x4] sm:$0x3] }
 0x22e   :  { %1369 = vmatpush.bf16.msra.mxu2 %v2740_v11  ;;  %1445 = vmatpush.bf16.msrb.mxu3 %v2747_v30  ;;  %v2755_v30 = vld [vmem:[%s3644_s6 + $0x10] sm:$0xff] }
 0x232   :  { %1370 = vmatpush.bf16.msra.mxu2 %v2739_v13 }
 0x236   :  { %1371 = vmatpush.bf16.msra.mxu2 %v2738_v17 }
 0x23a   :  { %1372 = vmatpush.bf16.msra.mxu2 %v2737_v21  ;;  %v122_v21 = vld [vmem:[#allocation6] sm:$0x8] }
 0x23b   :  { %v123_v23 = vsel %vm3374_vm12, 0, %v122_v21  ;;  %vm1966_vm12 = vcmask 1044995  }
 0x23c   :  { %124 = vst [vmem:[#allocation6] sm:$0x8] %v123_v23 }
 0x23d   :  { %2349 = vmatmul.msk.bf16.vlgmr.msrb.gmra.mxu2 %vm497_vm9, %v994_v2  ;;  %vm99_vm9 = vcmask 518146  }
 0x23e   :  { %vm3380_vm5 = vmand %vm99_vm9, %vm100_vm7  ;;  %1373 = vmatpush.bf16.msra.mxu2 %v2736_v24  ;;  %vm1197_vm7 = vsmask.f32 2306  ;;  %v2758_v24 = vld [vmem:[%s3644_s6 + $0x28] sm:$0xff] }
 0x23f   :  { %v103_v10 = vsel %vm3380_vm5, 0, %v102_v9  ;;  %vm3446_vm9 = vmand %vm105_vm6, %vm1223_vm2  ;;  %vm1307_vm6 = vcmask 785408   ;;  %1627 = vmatpush.bf16.msrb.mxu1 %v2758_v24 }
 0x240   :  { %104 = vst [vmem:[#allocation5] sm:$0x4] %v103_v10  ;;  %vm3452_vm1 = vmand %vm1196_vm11, %vm1197_vm7 }
 0x242   :  { %1374 = vmatpush.bf16.msra.mxu2 %v2735_v25  ;;  %v2756_v25 = vld [vmem:[%s3644_s6 + $0x18] sm:$0xff] }
 0x243   :  { %1628 = vmatpush.bf16.msrb.mxu1 %v2757_v8 }
 0x246   :  { %1698 = vmatpush.bf16.msrb.mxu2 %v2770_v36 }
 0x247   :  { %v1199_v53 = vld [vmem:[#allocation5] sm:$0x7]  ;;  %1629 = vmatpush.bf16.msrb.mxu1 %v2756_v25  ;;  %v2776_v25 = vld [vmem:[%s3645_s7 + $0x28] sm:$0xff] }
 0x24a   :  { %1699 = vmatpush.bf16.msrb.mxu2 %v2769_v40 }
 0x24b   :  { %1630 = vmatpush.bf16.msrb.mxu1 %v2755_v30  ;;  %v2788_v30 = vld [vmem:[%s3645_s7 + $0x88] sm:$0xff] }
 0x28d   :  { %v978_v3 = vpop.permute.xlu0 %977 }
 0x28e   :  { %984 = vst.msk [vmem:[#allocation10 - $0x2] sm:$0xfc] %vm983_vm3, %v978_v3  ;;  %vm3674_vm3 = vcmask 519168  }
 0x295   :  { %v980_v4 = vpop.permute.xlu0 %979 }
 0x296   :  { %986 = vst.msk [vmem:[#allocation10 + $0x6] sm:$0x3] %vm985_vm0, %v980_v4 }
 0x2b0   :  { %v1063_v14 = vpop.f32.mrf.mxu2  ;;  %v1173_v27 = vpop.f32.mrf.mxu3 }
 0x2b8   :  { %v1065_v22 = vpop.f32.mrf.mxu2  ;;  %v1175_v41 = vpop.f32.mrf.mxu3 }
 0x2c0   :  { %v1110_v29 = vpop.f32.mrf.mxu2 }
 0x2c1   :  { %v1111_v31 = vadd.f32 %v1110_v29, %v1063_v14  ;;  %v2762_v29 = vld [vmem:[%s3644_s6 + $0x48] sm:$0xff] }
 0x2c2   :  { %1573 = vmatpush.bf16.msrb.mxu0 %v2762_v29  ;;  %v2774_v29 = vld [vmem:[%s3645_s7 + $0x18] sm:$0xff] }
 0x2c3   :  { %v1178_v33 = vadd.f32 %v1173_v27, %v1111_v31  ;;  %v2768_v27 = vld [vmem:[%s3644_s6 + $0x78] sm:$0xff]  ;;  %v2767_v31 = vld [vmem:[%s3644_s6 + $0x70] sm:$0xff] }
 0x2c4   :  { %1700 = vmatpush.bf16.msrb.mxu2 %v2768_v27  ;;  %v2782_v27 = vld [vmem:[%s3645_s7 + $0x58] sm:$0xff] }
 0x2c5   :  { %v1182_v34 = vadd.f32 %v2814_v32, %v1178_v33  ;;  %v2761_v33 = vld [vmem:[%s3644_s6 + $0x40] sm:$0xff]  ;;  %1825 = vmatpush.bf16.msra.mxu3 %v2782_v27 }
 0x2c6   :  { %1574 = vmatpush.bf16.msrb.mxu0 %v2761_v33  ;;  %v2787_v33 = vld [vmem:[%s3645_s7 + $0x80] sm:$0xff] }
 0x2c7   :  { %v1184_v35 = vmax.f32 %v1182_v34, 0.0 }
 0x2c8   :  { %v1112_v37 = vpop.f32.mrf.mxu2  ;;  %1701 = vmatpush.bf16.msrb.mxu2 %v2767_v31  ;;  %v2781_v31 = vld [vmem:[%s3645_s7 + $0x50] sm:$0xff] }
 0x2c9   :  { %v1113_v38 = vadd.f32 %v1112_v37, %v1065_v22  ;;  %1205 = vrot.lane.b32.xlu0 %v1184_v35, %s2945_s2  ;;  %v1187_v39 = vpack.c.bf16 %v1184_v35, %v1184_v35  ;;  %1186 = vst.msk [vmem:[#allocation12] sm:$0xf] %vm3674_vm3, %v1184_v35  ;;  %v120_v22 = vsel %vm3380_vm5, 0, %v119_v20  ;;  %1826 = vmatpush.bf16.msra.mxu3 %v2781_v31 }
 0x2ca   :  { %121 = vst [vmem:[#allocation6] sm:$0x4] %v120_v22 }
 0x2cb   :  { %v1179_v44 = vadd.f32 %v1175_v41, %v1113_v38  ;;  %v1189_v45 = vshrl.u32 %v1187_v39, 16  ;;  %v1217_v46 = vrot.slane %v1187_v39, 7  ;;  %v1192_v50 = vshll.u32 %v1187_v39, 16  ;;  %v2815_v38 = vld [vmem:[%s3646_s8 + $0x4] ss:$0 sm:$0xff] }
 0x2cc   :  { %v2753_v39 = vld [vmem:[%s3644_s6] sm:$0xff]  ;;  %1702 = vmatpush.bf16.msrb.mxu2 %v2766_v47  ;;  %v2772_v47 = vld [vmem:[%s3645_s7 + $0x8] sm:$0xff] }
 0x2cd   :  { %v1183_v48 = vadd.f32 %v2814_v32, %v1179_v44  ;;  %v1191_v49 = vrot.slane %v1189_v45, 7  ;;  %v1226_v51 = vsel %vm3446_vm9, %v1217_v46, %v1225_v43  ;;  %v1218_v63 = vrot.slane %v1217_v46, 4  ;;  %v2754_v32 = vld [vmem:[%s3644_s6 + $0x8] sm:$0xff]  ;;  %v2760_v44 = vld [vmem:[%s3644_s6 + $0x38] sm:$0xff]  ;;  %v2765_v45 = vld [vmem:[%s3644_s6 + $0x60] sm:$0xff] }
 0x2ce   :  { %1227 = vst [vmem:[#allocation5] sm:$0x8] %v1226_v51  ;;  %1631 = vmatpush.bf16.msrb.mxu1 %v2754_v32  ;;  %1575 = vmatpush.bf16.msrb.mxu0 %v2760_v44  ;;  %v2773_v32 = vld [vmem:[%s3645_s7 + $0x10] sm:$0xff]  ;;  %v2783_v44 = vld [vmem:[%s3645_s7 + $0x60] sm:$0xff] }
 0x2cf   :  { %v3456_v54 = vmax.f32 %v1183_v48, 0.0  ;;  %v1194_v55 = vor.u32 %v1192_v50, %v1191_v49  ;;  %v2759_v49 = vld [vmem:[%s3644_s6 + $0x30] sm:$0xff]  ;;  %s2008_s6 = sshll.u32 %s3650_s12, 4  ;;  %s1997_s12 = sshll.u32 %s3649_s11, 4  ;;  %s2009_s6 = int_to_ptr.hbm [resolvable:$true] %s2008_s6  ;;  %s1998_s12 = int_to_ptr.hbm [resolvable:$true] %s1997_s12 }
 0x2d0   :  { %1703 = vmatpush.bf16.msrb.mxu2 %v2765_v45  ;;  %s2951_s11 = smov [#allocation15]  }
 0x2d1   :  { %v1214_v56 = vpack.c.bf16 %v3456_v54, %v3456_v54  ;;  %v1200_v57 = vsel %vm3452_vm1, %v1194_v55, %v1199_v53  ;;  %s2017_s18 = sshll.u32 %s2951_s11, 4  ;;  %s2018_s18 = int_to_ptr.vmem [resolvable:$true] %s2017_s18 }
 0x2d2   :  { %1201 = vst [vmem:[#allocation5] sm:$0x7] %v1200_v57  ;;  %1632 = vmatpush.bf16.msrb.mxu1 %v2753_v39  ;;  %1576 = vmatpush.bf16.msrb.mxu0 %v2759_v49  ;;  %v2778_v39 = vld [vmem:[%s3645_s7 + $0x38] sm:$0xff] }
 0x2d3   :  { %v1219_v59 = vrot.slane %v1214_v56, 7  ;;  %v1484_v56 = vld [vmem:[#allocation6] sm:$0x8] }
 0x2d5   :  { %v1220_v0 = vsel %vm3206_vm13, %v1218_v63, %v1219_v59  ;;  %vm1211_vm13 = vcmask 1048069  }
 0x2d6   :  { %v1229_v1 = vsel %vm3212_vm15, %v1220_v0, %v1228_v61  ;;  %1877 = vmatpush.bf16.msra.mxu0 %v2776_v25 }
 0x2d7   :  { %1230 = vst [vmem:[#allocation5 + $0x4] sm:$0x3] %v1229_v1 }
 0x2d9   :  { %v1231_v2 = vld [vmem:[#allocation5] sm:$0xf] }
 0x2da   :  { %v1381_v3 = vld [vmem:[#allocation5] sm:$0xe]  ;;  %v1261_v7 = vunpack.c.l.b16 %v1231_v2  ;;  %1878 = vmatpush.bf16.msra.mxu0 %v2775_v26 }
 0x2db   :  { %v1396_v11 = vunpack.c.l.b16 %v1381_v3  ;;  %v1468_v3 = vld [vmem:[#allocation6] sm:$0x7]  ;;  %v1716_v49 = vld [vmem:[#allocation5] sm:$0x7] }
 0x2de   :  { %v1232_v4 = vld [vmem:[#allocation5 + $0x4] sm:$0x1]  ;;  %1879 = vmatpush.bf16.msra.mxu0 %v2774_v29 }
 0x2df   :  { %v1245_v6 = vld [vmem:[#allocation5 + $0x4] sm:$0x3]  ;;  %v1326_v9 = vunpack.c.l.b16 %v1232_v4 }
 0x2e0   :  { %v1262_v10 = vunpack.c.l.b16 %v1245_v6  ;;  %v1726_v45 = vld [vmem:[#allocation5 + $0x4] sm:$0x3] }
 0x2e1   :  { %v1327_v12 = vpack.c.b16 %v1326_v9, %v1261_v7 }
 0x2e2   :  { %v1397_v13 = vpack.c.b16 %v1262_v10, %v1396_v11  ;;  %v1263_v14 = vpack.c.b16 %v1262_v10, %v1261_v7  ;;  %1880 = vmatpush.bf16.msra.mxu0 %v2773_v32 }
 0x2e3   :  { %2442 = vmatmul.msk.bf16.vlgmr.msra.gmra.mxu2 %vm1307_vm6, %v1327_v12 }
 0x2e4   :  { %v1398_v58 = vrot.slane %v1397_v13, 1  ;;  %v1267_v15 = vshll.u32 %v1263_v14, 16  ;;  %v1265_v16 = vshrl.u32 %v1263_v14, 16 }
 0x2e6   :  { %2479 = vmatmul.msk.bf16.vlgmr.msrb.gmra.mxu3 %vm1307_vm6, %v1398_v58  ;;  %v1269_v17 = vrot.slane %v1267_v15, 1  ;;  %v1487_v58 = vld [vmem:[#allocation6 + $0x4] sm:$0x3]  ;;  %1881 = vmatpush.bf16.msra.mxu0 %v2772_v47 }
 0x2e8   :  { %v1270_v18 = vor.u32 %v1269_v17, %v1265_v16 }
 0x2ea   :  { %2417 = vmatmul.msk.bf16.vlgmr.msra.gmra.mxu1 %vm1307_vm6, %v1270_v18 }
 0x2eb   :  { %1945 = vmatpush.bf16.msra.mxu1 %v2788_v30 }
 0x2ef   :  { %1946 = vmatpush.bf16.msra.mxu1 %v2787_v33 }
 0x33b   :  { %v1206_v19 = vpop.permute.xlu0 %1205 }
 0x33c   :  { %1212 = vst.msk [vmem:[#allocation12 - $0x5] sm:$0xe0] %vm1211_vm13, %v1206_v19 }
 0x366   :  { %v1376_v35 = vpop.f32.mrf.mxu2 }
 0x367   :  { %v1320_v34 = vpop.f32.mrf.mxu1 }
 0x368   :  { %v1377_v37 = vadd.f32 %v1376_v35, %v1320_v34  ;;  %v2786_v34 = vld [vmem:[%s3645_s7 + $0x78] sm:$0xff]  ;;  %v2779_v35 = vld [vmem:[%s3645_s7 + $0x40] sm:$0xff] }
 0x369   :  { %v1447_v41 = vpop.f32.mrf.mxu3  ;;  %1947 = vmatpush.bf16.msra.mxu1 %v2786_v34 }
 0x36a   :  { %v1452_v43 = vadd.f32 %v1447_v41, %v1377_v37  ;;  %v2771_v37 = vld [vmem:[%s3645_s7] sm:$0xff]  ;;  %v2784_v41 = vld [vmem:[%s3645_s7 + $0x68] sm:$0xff] }
 0x36b   :  { %1882 = vmatpush.bf16.msra.mxu0 %v2771_v37 }
 0x36c   :  { %v1456_v46 = vadd.f32 %v2815_v38, %v1452_v43  ;;  %v2777_v43 = vld [vmem:[%s3645_s7 + $0x30] sm:$0xff] }
 0x36e   :  { %v1458_v48 = vmax.f32 %v1456_v46, 0.0  ;;  %v1378_v51 = vpop.f32.mrf.mxu2  ;;  %v1725_v46 = vld [vmem:[#allocation5] sm:$0x8] }
 0x36f   :  { %v1322_v50 = vpop.f32.mrf.mxu1 }
 0x370   :  { %v1459_v53 = vpack.c.bf16 %v1458_v48, %v1458_v48  ;;  %v1379_v55 = vadd.f32 %v1378_v51, %v1322_v50  ;;  %v1728_v50 = vunpack.c.l.bf16 %v1726_v45 }
 0x371   :  { %v1449_v57 = vpop.f32.mrf.mxu3 }
 0x372   :  { %v1461_v59 = vshrl.u32 %v1459_v53, 16  ;;  %v1464_v61 = vshll.u32 %v1459_v53, 16  ;;  %v1453_v63 = vadd.f32 %v1449_v57, %v1379_v55  ;;  %v1727_v53 = vunpack.c.l.bf16 %v1725_v46 }
 0x373   :  { %v1717_v57 = vunpack.c.l.bf16 %v1716_v49 }
 0x374   :  { %v1463_v0 = vrot.slane %v1461_v59, 7  ;;  %v1485_v1 = vsel %vm3446_vm9, %v1464_v61, %v1484_v56  ;;  %v1457_v2 = vadd.f32 %v2815_v38, %v1453_v63  ;;  %v2785_v38 = vld [vmem:[%s3645_s7 + $0x70] sm:$0xff]  ;;  %v2816_v56 = vld [vmem:[%s3646_s8 + $0x5] ss:$0 sm:$0xff] }
 0x375   :  { %1486 = vst [vmem:[#allocation6] sm:$0x8] %v1485_v1  ;;  %1948 = vmatpush.bf16.msra.mxu1 %v2785_v38 }
 0x376   :  { %v1466_v4 = vor.u32 %v1464_v61, %v1463_v0  ;;  %v1471_v6 = vmax.f32 %v1457_v2, 0.0  ;;  %v1473_v13 = vrot.slane %v1463_v0, 4  ;;  %v1732_v61 = vrot.slane %v1728_v50, 1 }
 0x377   :  { %v1731_v0 = vrot.slane %v1727_v53, 1  ;;  %v1719_v2 = vrot.slane %v1717_v57, 1 }
 0x378   :  { %v1469_v7 = vsel %vm3452_vm1, %v1466_v4, %v1468_v3  ;;  %v1472_v9 = vpack.c.bf16 %v1471_v6, %v1471_v6  ;;  %vm128_vm1 = vcmask 785920  }
 0x379   :  { %1470 = vst [vmem:[#allocation6] sm:$0x7] %v1469_v7  ;;  %1949 = vmatpush.bf16.msra.mxu1 %v2784_v41  ;;  %v1733_v3 = vsel %vm593_vm10, %v1731_v0, %v1732_v61  ;;  %vm1748_vm10 = vcmask 1048070  }
 0x37a   :  { %v1475_v10 = vshrl.u32 %v1472_v9, 16  ;;  %v1478_v12 = vshll.u32 %v1472_v9, 16  ;;  %129 = vst.msk [vmem:[#allocation7] sm:$0xff] %vm128_vm1, %v2946_v60 }
 0x37b   :  { %131 = vst.msk [vmem:[#allocation7] sm:$0x1] %vm46_vm4, %v2946_v60 }
 0x37c   :  { %v1477_v11 = vrot.slane %v1475_v10, 7  ;;  %132 = vst.msk [vmem:[#allocation7 + $0x5] sm:$0x1] %vm46_vm4, %v2946_v60 }
 0x37d   :  { %133 = vst.msk [vmem:[#allocation7 + $0x6] sm:$0x1] %vm46_vm4, %v2946_v60  ;;  %v2780_v60 = vld [vmem:[%s3645_s7 + $0x48] sm:$0xff]  ;;  %1950 = vmatpush.bf16.msra.mxu1 %v2783_v44  ;;  %vm1751_vm4 = vcmask 523270   ;;  %s2947_s7 = smov [#allocation10]  }
 0x37e   :  { %v1480_v14 = vor.u32 %v1478_v12, %v1477_v11  ;;  %1827 = vmatpush.bf16.msra.mxu3 %v2780_v60  ;;  %s1984_s21 = sshll.u32 %s2947_s7, 4  ;;  %s1985_s21 = int_to_ptr.vmem [resolvable:$true] %s1984_s21 }
 0x37f   :  { %1989 = dma.vmem_to_hbm [thread:$0]  %s1985_s21, 128, %s1987_s24, [#allocation11]  }
 0x380   :  { %v1481_v42 = vsel %vm3286_vm8, %v1473_v13, %v1480_v14  ;;  %v1490_v16 = vld [vmem:[#allocation6] sm:$0xf]  ;;  %vm3680_vm8 = vmmov %vm3674_vm3 }
 0x381   :  { %v1488_v15 = vsel %vm3212_vm15, %v1481_v42, %v1487_v58  ;;  %v1639_v17 = vld [vmem:[#allocation6] sm:$0xe]  ;;  %v1520_v19 = vunpack.c.l.b16 %v1490_v16  ;;  %vm3679_vm15 = vmmov %vm3674_vm3 }
 0x382   :  { %1489 = vst [vmem:[#allocation6 + $0x4] sm:$0x3] %v1488_v15  ;;  %v1654_v22 = vunpack.c.l.b16 %v1639_v17  ;;  %1828 = vmatpush.bf16.msra.mxu3 %v2779_v35 }
 0x386   :  { %1829 = vmatpush.bf16.msra.mxu3 %v2778_v39 }
 0x389   :  { %v1491_v18 = vld [vmem:[#allocation6 + $0x4] sm:$0x1] }
 0x38a   :  { %v1504_v52 = vld [vmem:[#allocation6 + $0x4] sm:$0x3]  ;;  %v1584_v20 = vunpack.c.l.b16 %v1491_v18  ;;  %1830 = vmatpush.bf16.msra.mxu3 %v2777_v43 }
 0x38b   :  { %v1521_v21 = vunpack.c.l.b16 %v1504_v52 }
 0x38c   :  { %v1585_v23 = vpack.c.b16 %v1584_v20, %v1520_v19 }
 0x38d   :  { %v1655_v24 = vpack.c.b16 %v1521_v21, %v1654_v22  ;;  %v1522_v36 = vpack.c.b16 %v1521_v21, %v1520_v19 }
 0x38e   :  { %2541 = vmatmul.msk.bf16.vlgmr.msrb.gmra.mxu1 %vm1307_vm6, %v1585_v23 }
 0x38f   :  { %v1656_v8 = vrot.slane %v1655_v24, 1  ;;  %v1526_v28 = vshll.u32 %v1522_v36, 16  ;;  %v1524_v62 = vshrl.u32 %v1522_v36, 16 }
 0x391   :  { %2578 = vmatmul.msk.bf16.vlgmr.msrb.gmra.mxu2 %vm1307_vm6, %v1656_v8  ;;  %v1528_v5 = vrot.slane %v1526_v28, 1 }
 0x393   :  { %v1529_v40 = vor.u32 %v1528_v5, %v1524_v62  ;;  %v2817_v62 = vld [vmem:[%s3646_s8 + $0x6] ss:$0 sm:$0xff] }
 0x395   :  { %2516 = vmatmul.msk.bf16.vlgmr.msrb.gmra.mxu0 %vm1307_vm6, %v1529_v40 }
 0x40b   :  { %v1634_v48 = vpop.f32.mrf.mxu1 }
 0x412   :  { %v1578_v51 = vpop.f32.mrf.mxu0 }
 0x413   :  { %v1635_v55 = vadd.f32 %v1634_v48, %v1578_v51  ;;  %v1636_v7 = vpop.f32.mrf.mxu1 }
 0x414   :  { %v1705_v59 = vpop.f32.mrf.mxu2 }
 0x415   :  { %v1710_v63 = vadd.f32 %v1705_v59, %v1635_v55 }
 0x417   :  { %v1714_v1 = vadd.f32 %v2816_v56, %v1710_v63 }
 0x419   :  { %v1721_v4 = vadd.f32 %v1719_v2, %v1714_v1  ;;  %v1736_v6 = vadd.f32 %v1733_v3, %v1714_v1 }
 0x41a   :  { %v1580_v9 = vpop.f32.mrf.mxu0 }
 0x41b   :  { %v1722_v10 = vmax.f32 %v1721_v4, 0.0  ;;  %v1637_v11 = vadd.f32 %v1636_v7, %v1580_v9  ;;  %v1738_v12 = vmax.f32 %v1736_v6, 0.0 }
 0x41c   :  { %v1707_v13 = vpop.f32.mrf.mxu2 }
 0x41d   :  { %1724 = vst.msk [vmem:[#allocation7 + $0x1] sm:$0xf] %vm3679_vm15, %v1722_v10  ;;  %v1711_v14 = vadd.f32 %v1707_v13, %v1637_v11  ;;  %1742 = vrot.lane.b32.xlu1 %v1738_v12, %s2945_s2 }
 0x41e   :  { %1723 = vst.msk [vmem:[#allocation13] sm:$0xf] %vm3680_vm8, %v1722_v10 }
 0x41f   :  { %v1715_v58 = vadd.f32 %v2816_v56, %v1711_v14  ;;  %1752 = vst.msk [vmem:[#allocation7 + $0x1] sm:$0xc0] %vm1751_vm4, %v1738_v12 }
 0x421   :  { %v1737_v42 = vadd.f32 %v1732_v61, %v1715_v58 }
 0x423   :  { %v1739_v15 = vmax.f32 %v1737_v42, 0.0 }
 0x425   :  { %1753 = vst.msk [vmem:[#allocation7 + $0x9] sm:$0x3] %vm413_vm14, %v1739_v15  ;;  %1744 = vrot.lane.b32.xlu1 %v1739_v15, %s2945_s2 }
 0x426   :  { %v1754_v16 = vld [vmem:[#allocation7] ss:$2 sm:$0x1f] }
 0x427   :  { %v1755_v17 = vpack.c.bf16 %v1754_v16, %v1754_v16 }
 0x429   :  { %2640 = vmatmul.msk.bf16.vlgmr.msra.gmra.mxu0 %vm1307_vm6, %v1755_v17 }
 0x42c   :  { %v1769_v18 = vld [vmem:[#allocation7 + $0x1] ss:$2 sm:$0x1f]  ;;  %v1889_v52 = vld [vmem:[#allocation7 + $0x2] ss:$2 sm:$0x1f] }
 0x42d   :  { %1207 = vrot.lane.b32.xlu1 %v3456_v54, %s2945_s2  ;;  %v1770_v19 = vpack.c.bf16 %v1769_v18, %v1769_v18  ;;  %v1890_v20 = vpack.c.bf16 %v1889_v52, %v1889_v52 }
 0x42f   :  { %2615 = vmatmul.msk.bf16.vlgmr.msra.gmra.mxu3 %vm1307_vm6, %v1770_v19  ;;  %2677 = vmatmul.msk.bf16.vlgmr.msra.gmra.mxu1 %vm1307_vm6, %v1890_v20 }
 0x48f   :  { %v1743_v21 = vpop.permute.xlu1 %1742 }
 0x490   :  { %1749 = vst.msk [vmem:[#allocation13 - $0x6] sm:$0xc0] %vm1748_vm10, %v1743_v21 }
 0x497   :  { %v1745_v22 = vpop.permute.xlu1 %1744 }
 0x498   :  { %1750 = vst.msk [vmem:[#allocation13 + $0x2] sm:$0x3] %vm985_vm0, %v1745_v22  ;;  %vm3681_vm0 = vcmask 1040896  }
 0x499   :  { %2011 = dma.vmem_to_hbm [thread:$0]  %s2007_s26, 64, %s2009_s6, [#allocation14]  }
 0x49f   :  { %v1208_v54 = vpop.permute.xlu1 %1207 }
 0x4a0   :  { %1213 = vst.msk [vmem:[#allocation12 + $0x3] sm:$0x1] %vm3681_vm0, %v1208_v54 }
 0x4a1   :  { %2000 = dma.vmem_to_hbm [thread:$0]  %s1996_s16, 64, %s1998_s12, [#allocation11]  }
 0x4a6   :  { %v1884_v23 = vpop.f32.mrf.mxu0 }
 0x4ac   :  { %v1952_v24 = vpop.f32.mrf.mxu1 }
 0x4ae   :  { %v1886_v36 = vpop.f32.mrf.mxu0 }
 0x4b2   :  { %v1832_v8 = vpop.f32.mrf.mxu3 }
 0x4b3   :  { %v1885_v28 = vadd.f32 %v1884_v23, %v1832_v8 }
 0x4b4   :  { %v1954_v5 = vpop.f32.mrf.mxu1 }
 0x4b5   :  { %v1956_v40 = vadd.f32 %v1952_v24, %v1885_v28 }
 0x4b7   :  { %v1959_v25 = vadd.f32 %v2817_v62, %v1956_v40 }
 0x4b9   :  { %v1960_v26 = vmax.f32 %v1959_v25, 0.0 }
 0x4ba   :  { %v1834_v27 = vpop.f32.mrf.mxu3 }
 0x4bb   :  { %1963 = vrot.lane.b32.xlu2 %v1960_v26, %s2945_s2  ;;  %1961 = vst.msk [vmem:[#allocation15] sm:$0x3] %vm413_vm14, %v1960_v26 }
 0x515   :  { %v1964_v29 = vpop.permute.xlu2 %1963 }
 0x516   :  { %1967 = vst.msk [vmem:[#allocation15 - $0x3] sm:$0x18] %vm1966_vm12, %v1964_v29 }
 0x517   :  { %2022 = dma.vmem_to_hbm [thread:$0]  %s2018_s18, 32, %s2020_s20, [#allocation14]  }
 0x518   :  { %2938 = dma.done.wait [#allocation9], 128  }
 0x519   :  { %2939 = vsyncadd [#allocation9], 4294967168 }
 0x51a   :  { %2940 = dma.done.wait [#allocation11], 192  }
 0x51b   :  { %2941 = vsyncadd [#allocation11], 4294967104 }
 0x51c   :  { %2942 = dma.done.wait [#allocation14], 96  }
 0x51d   :  { %2943 = vsyncadd [#allocation14], 4294967200 }
 0x51e   :  { %2043 = vsyncpa [#allocation9], 1 }
 0x51f   :  { %2044 = vsyncpa [#allocation11], 1 }
 0x520   :  { %2045 = vsyncpa [#allocation14], 1 }

</bundles_post_ra>
